<compile_context>
chip_gen: v5e
topology: v5e:2x2
jax: 0.10.0
libtpu: 0.0.40
codegen_flags: <defaults>
</compile_context>

<pallas_src>
import functools

import jax
import jax.numpy as jnp
import numpy as np
from jax.experimental import pallas as pl
from jax.experimental.pallas import tpu as pltpu

# -------------------- static module config --------------------
IRREPS = ((8, 0, 1), (4, 1, -1), (2, 2, 1))   # (mul, l, parity) ~ "8x0e + 4x1o + 2x2e"
EPS = 1e-5
AFFINE = True
NORMALIZATION = "component"   # {'norm', 'component'}
REDUCE = "mean"

DIM = sum(mul * (2 * l + 1) for mul, l, _ in IRREPS)
NUM_FEATURES = sum(mul for mul, _, _ in IRREPS)
NUM_SCALAR = sum(mul for mul, l, p in IRREPS if l == 0 and p == 1)


def _build_irrep_maps():
    """Static numpy maps between channel-components (DIM) and features (NUM_FEATURES)."""
    P = np.zeros((NUM_FEATURES, DIM), np.float32)    # pools x^2 components -> per-feature norm
    E = np.zeros((DIM, NUM_FEATURES), np.float32)    # expands feature scale -> components
    Bx = np.zeros((DIM, NUM_SCALAR), np.float32)     # scatters bias -> scalar-even components
    sfeat = np.zeros((NUM_FEATURES,), np.float32)    # 1 for scalar-even features
    srow = np.zeros((DIM,), np.float32)              # 1 for scalar-even components
    ix = f = ib = 0
    for (mul, l, p) in IRREPS:
        d = 2 * l + 1
        pw = (1.0 / d) if NORMALIZATION == "component" else 1.0
        for m in range(mul):
            feat = f + m
            for k in range(d):
                c = ix + m * d + k
                P[feat, c] = pw
                E[c, feat] = 1.0
            if l == 0 and p == 1:
                sfeat[feat] = 1.0
                srow[ix + m * d] = 1.0
                Bx[ix + m * d, ib] = 1.0
                ib += 1
        ix += mul * d
        f += mul
    return P, E, Bx, sfeat, srow


_P_NP, _E_NP, _BX_NP, _SFEAT_NP, _SROW_NP = _build_irrep_maps()


def _round_up(a, b):
    return ((a + b - 1) // b) * b


# -------------------- Pallas kernels --------------------
def _stats_kernel(batch_ref, x_ref, sum_ref, sq_ref, cnt_ref, *, n_nodes, tiles_per_par):
    """Accumulate per-graph sum(x), sum(x^2) and node counts over node tiles."""
    @pl.when(pl.program_id(1) == 0)
    def _init():
        sum_ref[...] = jnp.zeros_like(sum_ref)
        sq_ref[...] = jnp.zeros_like(sq_ref)
        cnt_ref[...] = jnp.zeros_like(cnt_ref)

    tile_n = x_ref.shape[0]
    num_graphs = sum_ref.shape[1]
    tile_idx = pl.program_id(0) * tiles_per_par + pl.program_id(1)
    rem = n_nodes - tile_idx * tile_n          # in-bounds rows in this (possibly ragged) tile

    # Zero the ragged-tail rows of x: garbage (possibly NaN/Inf) times a zero
    # one-hot column would still poison the MXU accumulation.
    row_iota = jax.lax.broadcasted_iota(jnp.int32, x_ref.shape, 0)
    x = jnp.where(row_iota < rem, x_ref[...], 0.0)                        # (tile_n, DIM)

    # Lane-major one-hot (graphs on sublanes, nodes on lanes) -> canonical MXU
    # matmuls against the (tile_n, DIM) activations; tail columns masked so the
    # counts stay exact.
    gids = batch_ref[...]                                                 # (1, tile_n) int32
    graph_iota = jax.lax.broadcasted_iota(jnp.int32, (num_graphs, tile_n), 0)
    lane_iota = jax.lax.broadcasted_iota(jnp.int32, (num_graphs, tile_n), 1)
    onehot_t = ((graph_iota == gids) & (lane_iota < rem)).astype(jnp.float32)  # (B, tile_n)

    sum_ref[...] += jnp.dot(onehot_t, x, preferred_element_type=jnp.float32)[None]
    sq_ref[...] += jnp.dot(onehot_t, x * x, preferred_element_type=jnp.float32)[None]
    cnt_ref[...] += jnp.sum(onehot_t, axis=1, keepdims=True)[None]        # (1, B, 1)


def _apply_kernel(batch_ref, x_ref, sum_ref, sq_ref, cnt_ref,
                  pool_ref, expand_ref, fvec_ref, rvec_ref, o_ref):
    """out = x * scale[batch] + shift[batch].

    The per-graph scale/shift is derived in-kernel from the pass-1 statistics
    (tiny (B, DIM)-shaped math, recomputed per tile so the 'parallel' grid stays
    megacore-safe and no extra XLA glue ops / kernel launches are needed).
    """
    num_graphs = sum_ref.shape[1]
    tile_n = x_ref.shape[0]

    # ---- per-graph scale & shift ----
    cnt = jnp.maximum(jnp.sum(cnt_ref[...], axis=0), 1.0)                 # (B, 1)
    inv_c = 1.0 / cnt
    mean_x = jnp.sum(sum_ref[...], axis=0) * inv_c                        # (B, DIM)
    ex2 = jnp.sum(sq_ref[...], axis=0) * inv_c                            # (B, DIM)
    pooled = jnp.dot(ex2, pool_ref[...], preferred_element_type=jnp.float32)     # (B, F)
    mean_f = jnp.dot(mean_x, pool_ref[...], preferred_element_type=jnp.float32)  # (B, F)
    fvec = fvec_ref[...]
    sfeat = fvec[0:1, :]                                                  # scalar-even feature mask
    wfeat = fvec[1:2, :]                                                  # affine weight
    # one-pass variance for scalar-even features: E[x^2] - mean^2
    fnorm = jax.lax.rsqrt(pooled - sfeat * mean_f * mean_f + EPS) * wfeat         # (B, F)
    scale_g = jnp.dot(fnorm, expand_ref[...], preferred_element_type=jnp.float32)  # (B, DIM)
    rvec = rvec_ref[...]
    srow = rvec[0:1, :]                                                   # scalar-even row mask
    brow = rvec[1:2, :]                                                   # bias scattered to rows
    shift_g = brow - srow * mean_x * scale_g                              # (B, DIM)

    # ---- per-node gather via sublane-major one-hot (canonical MXU matmul) ----
    gids = batch_ref[...]                                                 # (tile_n, 1) int32
    onehot = (jax.lax.broadcasted_iota(jnp.int32, (tile_n, num_graphs), 1)
              == gids).astype(jnp.float32)                                # (tile_n, B)
    scale = jnp.dot(onehot, scale_g, preferred_element_type=jnp.float32)  # (tile_n, DIM)
    shift = jnp.dot(onehot, shift_g, preferred_element_type=jnp.float32)  # (tile_n, DIM)
    # Ragged tail rows produce garbage here; Pallas clips the writeback to N.
    o_ref[...] = x_ref[...] * scale + shift


# -------------------- wrapper --------------------
def equivariant_instance_norm(node_input, batch, weight, bias, num_graphs, *, tile_n=4096):
    """node_input: (N, DIM) f32; batch: (N,) int32 graph ids in [0, num_graphs)."""
    N, dim = node_input.shape
    assert dim == DIM
    x = node_input.astype(jnp.float32)

    # Lane-aligned node tile: big enough to amortize per-step pipeline overhead
    # (~1 MiB of real HBM data per pass-2 step at 4096), small enough that the
    # 128-lane-padded VMEM blocks fit comfortably on v5e/v6e/v7x.
    tile_n = _round_up(max(1, int(tile_n)), 128)
    tile_n = min(tile_n, _round_up(N, 128))
    num_tiles = pl.cdiv(N, tile_n)
    # pass-1 partial-sum axis: 2 lets both v7x TensorCores contribute; only used
    # when it divides the tile count so no block index ever goes out of range.
    n_par = 2 if (num_tiles % 2 == 0 and num_tiles >= 2) else 1
    tiles_per_par = num_tiles // n_par

    batch_row = batch.astype(jnp.int32).reshape(1, N)   # lane-major view (pass 1)
    batch_col = batch.astype(jnp.int32).reshape(N, 1)   # sublane-major view (pass 2)

    vmem_limit = 28 * 1024 * 1024

    # ---- pass 1: per-graph sum(x), sum(x^2), node counts ----
    stats_cost = pl.CostEstimate(
        flops=2 * N * num_graphs * (2 * DIM + 1) + 2 * N * DIM,
        transcendentals=0,
        bytes_accessed=(N * DIM + N + n_par * num_graphs * (2 * DIM + 1)) * 4)
    sum_x, sum_sq, counts = pl.pallas_call(
        functools.partial(_stats_kernel, n_nodes=N, tiles_per_par=tiles_per_par),
        out_shape=(jax.ShapeDtypeStruct((n_par, num_graphs, DIM), jnp.float32),
                   jax.ShapeDtypeStruct((n_par, num_graphs, DIM), jnp.float32),
                   jax.ShapeDtypeStruct((n_par, num_graphs, 1), jnp.float32)),
        grid=(n_par, tiles_per_par),
        in_specs=[pl.BlockSpec((1, tile_n), lambda p, t: (0, p * tiles_per_par + t)),
                  pl.BlockSpec((tile_n, DIM), lambda p, t: (p * tiles_per_par + t, 0))],
        out_specs=(pl.BlockSpec((1, num_graphs, DIM), lambda p, t: (p, 0, 0)),
                   pl.BlockSpec((1, num_graphs, DIM), lambda p, t: (p, 0, 0)),
                   pl.BlockSpec((1, num_graphs, 1), lambda p, t: (p, 0, 0))),
        compiler_params=pltpu.CompilerParams(
            dimension_semantics=("parallel", "arbitrary"),
            vmem_limit_bytes=vmem_limit),
        cost_estimate=stats_cost,
    )(batch_row, x)

    # ---- tiny static per-irrep constants (built once at trace time) ----
    if AFFINE:
        w = weight.astype(jnp.float32)
        b = bias.astype(jnp.float32)
    else:
        w = jnp.ones((NUM_FEATURES,), jnp.float32)
        b = jnp.zeros((NUM_SCALAR,), jnp.float32)
    pool_t = jnp.asarray(_P_NP.T)                                         # (DIM, F)
    expand_t = jnp.asarray(_E_NP.T)                                       # (F, DIM)
    fvec = jnp.stack([jnp.asarray(_SFEAT_NP), w], axis=0)                 # (2, F)
    rvec = jnp.stack([jnp.asarray(_SROW_NP), jnp.asarray(_BX_NP) @ b], axis=0)  # (2, DIM)

    # ---- pass 2: out = x * scale[batch] + shift[batch] ----
    apply_cost = pl.CostEstimate(
        flops=4 * N * num_graphs * DIM + 2 * N * DIM,
        transcendentals=num_tiles * num_graphs * NUM_FEATURES,
        bytes_accessed=(2 * N * DIM + N) * 4)
    out = pl.pallas_call(
        _apply_kernel,
        out_shape=jax.ShapeDtypeStruct((N, DIM), jnp.float32),
        grid=(num_tiles,),
        in_specs=[pl.BlockSpec((tile_n, 1), lambda i: (i, 0)),
                  pl.BlockSpec((tile_n, DIM), lambda i: (i, 0)),
                  pl.BlockSpec((n_par, num_graphs, DIM), lambda i: (0, 0, 0)),
                  pl.BlockSpec((n_par, num_graphs, DIM), lambda i: (0, 0, 0)),
                  pl.BlockSpec((n_par, num_graphs, 1), lambda i: (0, 0, 0)),
                  pl.BlockSpec((DIM, NUM_FEATURES), lambda i: (0, 0)),
                  pl.BlockSpec((NUM_FEATURES, DIM), lambda i: (0, 0)),
                  pl.BlockSpec((2, NUM_FEATURES), lambda i: (0, 0)),
                  pl.BlockSpec((2, DIM), lambda i: (0, 0))],
        out_specs=pl.BlockSpec((tile_n, DIM), lambda i: (i, 0)),
        compiler_params=pltpu.CompilerParams(
            dimension_semantics=("parallel",),
            vmem_limit_bytes=vmem_limit),
        cost_estimate=apply_cost,
    )(batch_col, x, sum_x, sum_sq, counts, pool_t, expand_t, fvec, rvec)
    return out


# -------------------- pure-JAX reference (torch semantics) --------------------
def _reference(x, batch, weight, bias, num_graphs):
    N = x.shape[0]
    counts = jnp.maximum(
        jax.ops.segment_sum(jnp.ones((N,), jnp.float32), batch, num_graphs), 1.0)
    fields = []
    ix = iw = ib = 0
    for (mul, l, p) in IRREPS:
        d = 2 * l + 1
        field = x[:, ix:ix + mul * d].reshape(N, mul, d)
        ix += mul * d
        if l == 0 and p == 1:
            fmean = jax.ops.segment_sum(field, batch, num_graphs) / counts[:, None, None]
            field = field - fmean[batch]
        if NORMALIZATION == "norm":
            fnorm = (field ** 2).sum(-1)
        else:
            fnorm = (field ** 2).mean(-1)
        fnorm = jax.ops.segment_sum(fnorm, batch, num_graphs) / counts[:, None]  # reduce='mean'
        fnorm = (fnorm + EPS) ** -0.5
        if AFFINE:
            fnorm = fnorm * weight[iw:iw + mul][None, :]
            iw += mul
        field = field * fnorm[batch][:, :, None]
        if AFFINE and d == 1 and p == 1:
            field = field + bias[ib:ib + mul].reshape(mul, 1)
            ib += mul
        fields.append(field.reshape(N, mul * d))
    return jnp.concatenate(fields, axis=-1)


# -------------------- demo --------------------
if __name__ == "__main__":
    key = jax.random.PRNGKey(0)
    k_x, k_w, k_b = jax.random.split(key, 3)

    B = 4
    sizes = [300, 250, 250, 200]
    N = sum(sizes)                                        # 1000 nodes -> 4 ragged-tail tiles of 256
    batch = jnp.asarray(np.repeat(np.arange(B), sizes), dtype=jnp.int32)
    x = jax.random.normal(k_x, (N, DIM), dtype=jnp.float32)

    # parameters: __init__ uses ones/zeros; perturb deterministically so the
    # affine path is exercised non-trivially.
    affine_weight = jnp.ones((NUM_FEATURES,), jnp.float32) \
        + 0.1 * jax.random.normal(k_w, (NUM_FEATURES,), jnp.float32)
    affine_bias = 0.1 * jax.random.normal(k_b, (NUM_SCALAR,), jnp.float32)

    run = jax.jit(functools.partial(equivariant_instance_norm,
                                    num_graphs=B, tile_n=256))
    out = jax.block_until_ready(run(x, batch, affine_weight, affine_bias))

    ref = _reference(x, batch, affine_weight, affine_bias, B)
    assert out.shape == (N, DIM) and out.dtype == jnp.float32
    np.testing.assert_allclose(np.asarray(out), np.asarray(ref), rtol=2e-4, atol=2e-4)

    print("KERNEL_OK")
</pallas_src>

<mosaic_0001>
module attributes {stable_mosaic.version = 11 : i64} {
  func.func @_stats_kernel(%arg0: i32, %arg1: i32, %arg2: memref<1x256xi32, #tpu.memory_space<vmem>>, %arg3: memref<256x30xf32, #tpu.memory_space<vmem>>, %arg4: memref<1x4x30xf32, #tpu.memory_space<vmem>>, %arg5: memref<1x4x30xf32, #tpu.memory_space<vmem>>, %arg6: memref<1x4x1xf32, #tpu.memory_space<vmem>>) attributes {dimension_semantics = [#tpu.dimension_semantics<parallel>, #tpu.dimension_semantics<arbitrary>], iteration_bounds = array<i64: 2, 2>, scalar_prefetch = 0 : i64, scratch_operands = 0 : i64, tpu.core_type = #tpu.core_type<tc>, window_params = [{transform_indices = @transform_0, window_bounds = array<i64: 1, 256>}, {transform_indices = @transform_1, window_bounds = array<i64: 256, 30>}, {transform_indices = @transform_2, window_bounds = array<i64: 1, 4, 30>}, {transform_indices = @transform_3, window_bounds = array<i64: 1, 4, 30>}, {transform_indices = @transform_4, window_bounds = array<i64: 1, 4, 1>}]} {
    %c0_i32 = arith.constant 0 : i32
    %0 = arith.cmpi eq, %arg1, %c0_i32 : i32
    %1 = arith.extui %0 : i1 to i32
    %c0_i32_0 = arith.constant 0 : i32
    %2 = arith.cmpi ne, %1, %c0_i32_0 : i32
    scf.if %2 {
      %cst_25 = arith.constant 0.000000e+00 : f32
      %40 = vector.broadcast %cst_25 : f32 to vector<1x4x30xf32>
      %c0_26 = arith.constant 0 : index
      %c0_27 = arith.constant 0 : index
      %c0_28 = arith.constant 0 : index
      %41 = vector.load %arg4[%c0_26, %c0_27, %c0_28] : memref<1x4x30xf32, #tpu.memory_space<vmem>>, vector<1x4x30xf32>
      tpu.vector_store %arg4[%c0_26, %c0_27, %c0_28], %40 {strides = array<i32>} : memref<1x4x30xf32, #tpu.memory_space<vmem>>, vector<1x4x30xf32>,
      %cst_29 = arith.constant 0.000000e+00 : f32
      %42 = vector.broadcast %cst_29 : f32 to vector<1x4x30xf32>
      %c0_30 = arith.constant 0 : index
      %c0_31 = arith.constant 0 : index
      %c0_32 = arith.constant 0 : index
      %43 = vector.load %arg5[%c0_30, %c0_31, %c0_32] : memref<1x4x30xf32, #tpu.memory_space<vmem>>, vector<1x4x30xf32>
      tpu.vector_store %arg5[%c0_30, %c0_31, %c0_32], %42 {strides = array<i32>} : memref<1x4x30xf32, #tpu.memory_space<vmem>>, vector<1x4x30xf32>,
      %cst_33 = arith.constant 0.000000e+00 : f32
      %44 = vector.broadcast %cst_33 : f32 to vector<1x4x1xf32>
      %c0_34 = arith.constant 0 : index
      %c0_35 = arith.constant 0 : index
      %c0_36 = arith.constant 0 : index
      %45 = vector.load %arg6[%c0_34, %c0_35, %c0_36] : memref<1x4x1xf32, #tpu.memory_space<vmem>>, vector<1x4x1xf32>
      tpu.vector_store %arg6[%c0_34, %c0_35, %c0_36], %44 {strides = array<i32>} : memref<1x4x1xf32, #tpu.memory_space<vmem>>, vector<1x4x1xf32>,
    } else {
    }
    %c2_i32 = arith.constant 2 : i32
    %3 = arith.muli %arg0, %c2_i32 : i32
    %4 = arith.addi %3, %arg1 : i32
    %c256_i32 = arith.constant 256 : i32
    %5 = arith.muli %4, %c256_i32 : i32
    %c1000_i32 = arith.constant 1000 : i32
    %6 = arith.subi %c1000_i32, %5 : i32
    %7 = tpu.iota {dimensions = array<i32: 0>} : vector<256x30xi32>
    %8 = vector.broadcast %6 : i32 to vector<256x30xi32>
    %9 = arith.cmpi slt, %7, %8 : vector<256x30xi32>
    %c0 = arith.constant 0 : index
    %c0_1 = arith.constant 0 : index
    %10 = vector.load %arg3[%c0, %c0_1] : memref<256x30xf32, #tpu.memory_space<vmem>>, vector<256x30xf32>
    %cst = arith.constant 0.000000e+00 : f32
    %11 = vector.broadcast %cst : f32 to vector<256x30xf32>
    %12 = arith.select %9, %10, %11 : vector<256x30xi1>, vector<256x30xf32>
    %c0_2 = arith.constant 0 : index
    %c0_3 = arith.constant 0 : index
    %13 = vector.load %arg2[%c0_2, %c0_3] : memref<1x256xi32, #tpu.memory_space<vmem>>, vector<1x256xi32>
    %14 = tpu.iota {dimensions = array<i32: 0>} : vector<4x256xi32>
    %15 = tpu.iota {dimensions = array<i32: 1>} : vector<4x256xi32>
    %16 = vector.broadcast %13 : vector<1x256xi32> to vector<4x256xi32>
    %17 = arith.cmpi eq, %14, %16 : vector<4x256xi32>
    %18 = vector.broadcast %6 : i32 to vector<4x256xi32>
    %19 = arith.cmpi slt, %15, %18 : vector<4x256xi32>
    %20 = arith.andi %17, %19 : vector<4x256xi1>
    %21 = arith.extui %20 : vector<4x256xi1> to vector<4x256xi32>
    %22 = arith.sitofp %21 : vector<4x256xi32> to vector<4x256xf32>
    %c0_4 = arith.constant 0 : index
    %c0_5 = arith.constant 0 : index
    %c0_6 = arith.constant 0 : index
    %23 = vector.load %arg4[%c0_4, %c0_5, %c0_6] : memref<1x4x30xf32, #tpu.memory_space<vmem>>, vector<1x4x30xf32>
    %cst_7 = arith.constant dense<0.000000e+00> : vector<4x30xf32>
    %24 = tpu.matmul %22, %12, %cst_7 {dimension_numbers = #tpu.dot_dimension_numbers<[1], [0], [0], [1], [0, 0, 1, 1], [], []>} : vector<4x256xf32>, vector<256x30xf32>, vector<4x30xf32> -> vector<4x30xf32>
    %25 = vector.shape_cast %24 : vector<4x30xf32> to vector<1x4x30xf32>
    %26 = arith.addf %23, %25 : vector<1x4x30xf32>
    %c0_8 = arith.constant 0 : index
    %c0_9 = arith.constant 0 : index
    %c0_10 = arith.constant 0 : index
    %27 = vector.load %arg4[%c0_8, %c0_9, %c0_10] : memref<1x4x30xf32, #tpu.memory_space<vmem>>, vector<1x4x30xf32>
    tpu.vector_store %arg4[%c0_8, %c0_9, %c0_10], %26 {strides = array<i32>} : memref<1x4x30xf32, #tpu.memory_space<vmem>>, vector<1x4x30xf32>,
    %c0_11 = arith.constant 0 : index
    %c0_12 = arith.constant 0 : index
    %c0_13 = arith.constant 0 : index
    %28 = vector.load %arg5[%c0_11, %c0_12, %c0_13] : memref<1x4x30xf32, #tpu.memory_space<vmem>>, vector<1x4x30xf32>
    %29 = arith.mulf %12, %12 : vector<256x30xf32>
    %cst_14 = arith.constant dense<0.000000e+00> : vector<4x30xf32>
    %30 = tpu.matmul %22, %29, %cst_14 {dimension_numbers = #tpu.dot_dimension_numbers<[1], [0], [0], [1], [0, 0, 1, 1], [], []>} : vector<4x256xf32>, vector<256x30xf32>, vector<4x30xf32> -> vector<4x30xf32>
    %31 = vector.shape_cast %30 : vector<4x30xf32> to vector<1x4x30xf32>
    %32 = arith.addf %28, %31 : vector<1x4x30xf32>
    %c0_15 = arith.constant 0 : index
    %c0_16 = arith.constant 0 : index
    %c0_17 = arith.constant 0 : index
    %33 = vector.load %arg5[%c0_15, %c0_16, %c0_17] : memref<1x4x30xf32, #tpu.memory_space<vmem>>, vector<1x4x30xf32>
    tpu.vector_store %arg5[%c0_15, %c0_16, %c0_17], %32 {strides = array<i32>} : memref<1x4x30xf32, #tpu.memory_space<vmem>>, vector<1x4x30xf32>,
    %c0_18 = arith.constant 0 : index
    %c0_19 = arith.constant 0 : index
    %c0_20 = arith.constant 0 : index
    %34 = vector.load %arg6[%c0_18, %c0_19, %c0_20] : memref<1x4x1xf32, #tpu.memory_space<vmem>>, vector<1x4x1xf32>
    %cst_21 = arith.constant dense<0.000000e+00> : vector<4xf32>
    %35 = vector.multi_reduction <add>, %22, %cst_21 [1] : vector<4x256xf32> to vector<4xf32>
    %36 = vector.shape_cast %35 : vector<4xf32> to vector<4x1xf32>
    %37 = vector.shape_cast %36 : vector<4x1xf32> to vector<1x4x1xf32>
    %38 = arith.addf %34, %37 : vector<1x4x1xf32>
    %c0_22 = arith.constant 0 : index
    %c0_23 = arith.constant 0 : index
    %c0_24 = arith.constant 0 : index
    %39 = vector.load %arg6[%c0_22, %c0_23, %c0_24] : memref<1x4x1xf32, #tpu.memory_space<vmem>>, vector<1x4x1xf32>
    tpu.vector_store %arg6[%c0_22, %c0_23, %c0_24], %38 {strides = array<i32>} : memref<1x4x1xf32, #tpu.memory_space<vmem>>, vector<1x4x1xf32>,
    return
  }
  func.func @transform_0(%arg0: i32, %arg1: i32) -> (i32, i32) {
    %c2_i32 = arith.constant 2 : i32
    %0 = arith.muli %arg0, %c2_i32 : i32
    %1 = arith.addi %0, %arg1 : i32
    %c0_i32 = arith.constant 0 : i32
    %c0_i32_0 = arith.constant 0 : i32
    return %c0_i32, %1 : i32, i32
  }
  func.func @transform_1(%arg0: i32, %arg1: i32) -> (i32, i32) {
    %c2_i32 = arith.constant 2 : i32
    %0 = arith.muli %arg0, %c2_i32 : i32
    %1 = arith.addi %0, %arg1 : i32
    %c0_i32 = arith.constant 0 : i32
    %c0_i32_0 = arith.constant 0 : i32
    return %1, %c0_i32 : i32, i32
  }
  func.func @transform_2(%arg0: i32, %arg1: i32) -> (i32, i32, i32) {
    %c0_i32 = arith.constant 0 : i32
    %c0_i32_0 = arith.constant 0 : i32
    %c0_i32_1 = arith.constant 0 : i32
    return %arg0, %c0_i32, %c0_i32_0 : i32, i32, i32
  }
  func.func @transform_3(%arg0: i32, %arg1: i32) -> (i32, i32, i32) {
    %c0_i32 = arith.constant 0 : i32
    %c0_i32_0 = arith.constant 0 : i32
    %c0_i32_1 = arith.constant 0 : i32
    return %arg0, %c0_i32, %c0_i32_0 : i32, i32, i32
  }
  func.func @transform_4(%arg0: i32, %arg1: i32) -> (i32, i32, i32) {
    %c0_i32 = arith.constant 0 : i32
    %c0_i32_0 = arith.constant 0 : i32
    %c0_i32_1 = arith.constant 0 : i32
    return %arg0, %c0_i32, %c0_i32_0 : i32, i32, i32
  }
}

module attributes {stable_mosaic.version = 11 : i64} {
  func.func @_apply_kernel(%arg0: i32, %arg1: memref<256x1xi32, #tpu.memory_space<vmem>>, %arg2: memref<256x30xf32, #tpu.memory_space<vmem>>, %arg3: memref<2x4x30xf32, #tpu.memory_space<vmem>>, %arg4: memref<2x4x30xf32, #tpu.memory_space<vmem>>, %arg5: memref<2x4x1xf32, #tpu.memory_space<vmem>>, %arg6: memref<30x14xf32, #tpu.memory_space<vmem>>, %arg7: memref<14x30xf32, #tpu.memory_space<vmem>>, %arg8: memref<2x14xf32, #tpu.memory_space<vmem>>, %arg9: memref<2x30xf32, #tpu.memory_space<vmem>>, %arg10: memref<256x30xf32, #tpu.memory_space<vmem>>) attributes {dimension_semantics = [#tpu.dimension_semantics<parallel>], iteration_bounds = array<i64: 4>, scalar_prefetch = 0 : i64, scratch_operands = 0 : i64, tpu.core_type = #tpu.core_type<tc>, window_params = [{transform_indices = @transform_0, window_bounds = array<i64: 256, 1>}, {transform_indices = @transform_1, window_bounds = array<i64: 256, 30>}, {pipeline_mode = #tpu.pipeline_mode<synchronous>, transform_indices = @transform_2, window_bounds = array<i64: 2, 4, 30>}, {pipeline_mode = #tpu.pipeline_mode<synchronous>, transform_indices = @transform_3, window_bounds = array<i64: 2, 4, 30>}, {pipeline_mode = #tpu.pipeline_mode<synchronous>, transform_indices = @transform_4, window_bounds = array<i64: 2, 4, 1>}, {pipeline_mode = #tpu.pipeline_mode<synchronous>, transform_indices = @transform_5, window_bounds = array<i64: 30, 14>}, {pipeline_mode = #tpu.pipeline_mode<synchronous>, transform_indices = @transform_6, window_bounds = array<i64: 14, 30>}, {pipeline_mode = #tpu.pipeline_mode<synchronous>, transform_indices = @transform_7, window_bounds = array<i64: 2, 14>}, {pipeline_mode = #tpu.pipeline_mode<synchronous>, transform_indices = @transform_8, window_bounds = array<i64: 2, 30>}, {transform_indices = @transform_9, window_bounds = array<i64: 256, 30>}]} {
    %c0 = arith.constant 0 : index
    %c0_0 = arith.constant 0 : index
    %c0_1 = arith.constant 0 : index
    %0 = vector.load %arg5[%c0, %c0_0, %c0_1] : memref<2x4x1xf32, #tpu.memory_space<vmem>>, vector<2x4x1xf32>
    %cst = arith.constant dense<0.000000e+00> : vector<4x1xf32>
    %1 = vector.multi_reduction <add>, %0, %cst [0] : vector<2x4x1xf32> to vector<4x1xf32>
    %cst_2 = arith.constant 1.000000e+00 : f32
    %2 = vector.broadcast %cst_2 : f32 to vector<4x1xf32>
    %3 = arith.maximumf %1, %2 : vector<4x1xf32>
    %cst_3 = arith.constant 1.000000e+00 : f32
    %4 = vector.broadcast %cst_3 : f32 to vector<4x1xf32>
    %5 = arith.divf %4, %3 : vector<4x1xf32>
    %c0_4 = arith.constant 0 : index
    %c0_5 = arith.constant 0 : index
    %c0_6 = arith.constant 0 : index
    %6 = vector.load %arg3[%c0_4, %c0_5, %c0_6] : memref<2x4x30xf32, #tpu.memory_space<vmem>>, vector<2x4x30xf32>
    %cst_7 = arith.constant dense<0.000000e+00> : vector<4x30xf32>
    %7 = vector.multi_reduction <add>, %6, %cst_7 [0] : vector<2x4x30xf32> to vector<4x30xf32>
    %8 = vector.broadcast %5 : vector<4x1xf32> to vector<4x30xf32>
    %9 = arith.mulf %7, %8 : vector<4x30xf32>
    %c0_8 = arith.constant 0 : index
    %c0_9 = arith.constant 0 : index
    %c0_10 = arith.constant 0 : index
    %10 = vector.load %arg4[%c0_8, %c0_9, %c0_10] : memref<2x4x30xf32, #tpu.memory_space<vmem>>, vector<2x4x30xf32>
    %cst_11 = arith.constant dense<0.000000e+00> : vector<4x30xf32>
    %11 = vector.multi_reduction <add>, %10, %cst_11 [0] : vector<2x4x30xf32> to vector<4x30xf32>
    %12 = vector.broadcast %5 : vector<4x1xf32> to vector<4x30xf32>
    %13 = arith.mulf %11, %12 : vector<4x30xf32>
    %c0_12 = arith.constant 0 : index
    %c0_13 = arith.constant 0 : index
    %14 = vector.load %arg6[%c0_12, %c0_13] : memref<30x14xf32, #tpu.memory_space<vmem>>, vector<30x14xf32>
    %cst_14 = arith.constant dense<0.000000e+00> : vector<4x14xf32>
    %15 = tpu.matmul %13, %14, %cst_14 {dimension_numbers = #tpu.dot_dimension_numbers<[1], [0], [0], [1], [0, 0, 1, 1], [], []>} : vector<4x30xf32>, vector<30x14xf32>, vector<4x14xf32> -> vector<4x14xf32>
    %c0_15 = arith.constant 0 : index
    %c0_16 = arith.constant 0 : index
    %16 = vector.load %arg6[%c0_15, %c0_16] : memref<30x14xf32, #tpu.memory_space<vmem>>, vector<30x14xf32>
    %cst_17 = arith.constant dense<0.000000e+00> : vector<4x14xf32>
    %17 = tpu.matmul %9, %16, %cst_17 {dimension_numbers = #tpu.dot_dimension_numbers<[1], [0], [0], [1], [0, 0, 1, 1], [], []>} : vector<4x30xf32>, vector<30x14xf32>, vector<4x14xf32> -> vector<4x14xf32>
    %c0_18 = arith.constant 0 : index
    %c0_19 = arith.constant 0 : index
    %18 = vector.load %arg8[%c0_18, %c0_19] : memref<2x14xf32, #tpu.memory_space<vmem>>, vector<2x14xf32>
    %19 = vector.extract_strided_slice %18 {offsets = [0, 0], sizes = [1, 14], strides = [1, 1]} : vector<2x14xf32> to vector<1x14xf32>
    %20 = vector.extract_strided_slice %18 {offsets = [1, 0], sizes = [1, 14], strides = [1, 1]} : vector<2x14xf32> to vector<1x14xf32>
    %21 = vector.broadcast %19 : vector<1x14xf32> to vector<4x14xf32>
    %22 = arith.mulf %21, %17 : vector<4x14xf32>
    %23 = arith.mulf %22, %17 : vector<4x14xf32>
    %24 = arith.subf %15, %23 : vector<4x14xf32>
    %cst_20 = arith.constant 9.99999974E-6 : f32
    %25 = vector.broadcast %cst_20 : f32 to vector<4x14xf32>
    %26 = arith.addf %24, %25 : vector<4x14xf32>
    %27 = math.rsqrt %26 : vector<4x14xf32>
    %28 = vector.broadcast %20 : vector<1x14xf32> to vector<4x14xf32>
    %29 = arith.mulf %27, %28 : vector<4x14xf32>
    %c0_21 = arith.constant 0 : index
    %c0_22 = arith.constant 0 : index
    %30 = vector.load %arg7[%c0_21, %c0_22] : memref<14x30xf32, #tpu.memory_space<vmem>>, vector<14x30xf32>
    %cst_23 = arith.constant dense<0.000000e+00> : vector<4x30xf32>
    %31 = tpu.matmul %29, %30, %cst_23 {dimension_numbers = #tpu.dot_dimension_numbers<[1], [0], [0], [1], [0, 0, 1, 1], [], []>} : vector<4x14xf32>, vector<14x30xf32>, vector<4x30xf32> -> vector<4x30xf32>
    %c0_24 = arith.constant 0 : index
    %c0_25 = arith.constant 0 : index
    %32 = vector.load %arg9[%c0_24, %c0_25] : memref<2x30xf32, #tpu.memory_space<vmem>>, vector<2x30xf32>
    %33 = vector.extract_strided_slice %32 {offsets = [0, 0], sizes = [1, 30], strides = [1, 1]} : vector<2x30xf32> to vector<1x30xf32>
    %34 = vector.extract_strided_slice %32 {offsets = [1, 0], sizes = [1, 30], strides = [1, 1]} : vector<2x30xf32> to vector<1x30xf32>
    %35 = vector.broadcast %33 : vector<1x30xf32> to vector<4x30xf32>
    %36 = arith.mulf %35, %9 : vector<4x30xf32>
    %37 = arith.mulf %36, %31 : vector<4x30xf32>
    %38 = vector.broadcast %34 : vector<1x30xf32> to vector<4x30xf32>
    %39 = arith.subf %38, %37 : vector<4x30xf32>
    %c0_26 = arith.constant 0 : index
    %c0_27 = arith.constant 0 : index
    %40 = vector.load %arg1[%c0_26, %c0_27] : memref<256x1xi32, #tpu.memory_space<vmem>>, vector<256x1xi32>
    %41 = tpu.iota {dimensions = array<i32: 1>} : vector<256x4xi32>
    %42 = vector.broadcast %40 : vector<256x1xi32> to vector<256x4xi32>
    %43 = arith.cmpi eq, %41, %42 : vector<256x4xi32>
    %44 = arith.extui %43 : vector<256x4xi1> to vector<256x4xi32>
    %45 = arith.sitofp %44 : vector<256x4xi32> to vector<256x4xf32>
    %cst_28 = arith.constant dense<0.000000e+00> : vector<256x30xf32>
    %46 = tpu.matmul %45, %31, %cst_28 {dimension_numbers = #tpu.dot_dimension_numbers<[1], [0], [0], [1], [0, 0, 1, 1], [], []>} : vector<256x4xf32>, vector<4x30xf32>, vector<256x30xf32> -> vector<256x30xf32>
    %cst_29 = arith.constant dense<0.000000e+00> : vector<256x30xf32>
    %47 = tpu.matmul %45, %39, %cst_29 {dimension_numbers = #tpu.dot_dimension_numbers<[1], [0], [0], [1], [0, 0, 1, 1], [], []>} : vector<256x4xf32>, vector<4x30xf32>, vector<256x30xf32> -> vector<256x30xf32>
    %c0_30 = arith.constant 0 : index
    %c0_31 = arith.constant 0 : index
    %48 = vector.load %arg2[%c0_30, %c0_31] : memref<256x30xf32, #tpu.memory_space<vmem>>, vector<256x30xf32>
    %49 = arith.mulf %48, %46 : vector<256x30xf32>
    %50 = arith.addf %49, %47 : vector<256x30xf32>
    %c0_32 = arith.constant 0 : index
    %c0_33 = arith.constant 0 : index
    %51 = vector.load %arg10[%c0_32, %c0_33] : memref<256x30xf32, #tpu.memory_space<vmem>>, vector<256x30xf32>
    tpu.vector_store %arg10[%c0_32, %c0_33], %50 {strides = array<i32>} : memref<256x30xf32, #tpu.memory_space<vmem>>, vector<256x30xf32>,
    return
  }
  func.func @transform_0(%arg0: i32) -> (i32, i32) {
    %c0_i32 = arith.constant 0 : i32
    %c0_i32_0 = arith.constant 0 : i32
    return %arg0, %c0_i32 : i32, i32
  }
  func.func @transform_1(%arg0: i32) -> (i32, i32) {
    %c0_i32 = arith.constant 0 : i32
    %c0_i32_0 = arith.constant 0 : i32
    return %arg0, %c0_i32 : i32, i32
  }
  func.func @transform_2(%arg0: i32) -> (i32, i32, i32) {
    %c0_i32 = arith.constant 0 : i32
    %c0_i32_0 = arith.constant 0 : i32
    %c0_i32_1 = arith.constant 0 : i32
    %c0_i32_2 = arith.constant 0 : i32
    return %c0_i32, %c0_i32_0, %c0_i32_1 : i32, i32, i32
  }
  func.func @transform_3(%arg0: i32) -> (i32, i32, i32) {
    %c0_i32 = arith.constant 0 : i32
    %c0_i32_0 = arith.constant 0 : i32
    %c0_i32_1 = arith.constant 0 : i32
    %c0_i32_2 = arith.constant 0 : i32
    return %c0_i32, %c0_i32_0, %c0_i32_1 : i32, i32, i32
  }
  func.func @transform_4(%arg0: i32) -> (i32, i32, i32) {
    %c0_i32 = arith.constant 0 : i32
    %c0_i32_0 = arith.constant 0 : i32
    %c0_i32_1 = arith.constant 0 : i32
    %c0_i32_2 = arith.constant 0 : i32
    return %c0_i32, %c0_i32_0, %c0_i32_1 : i32, i32, i32
  }
  func.func @transform_5(%arg0: i32) -> (i32, i32) {
    %c0_i32 = arith.constant 0 : i32
    %c0_i32_0 = arith.constant 0 : i32
    %c0_i32_1 = arith.constant 0 : i32
    return %c0_i32, %c0_i32_0 : i32, i32
  }
  func.func @transform_6(%arg0: i32) -> (i32, i32) {
    %c0_i32 = arith.constant 0 : i32
    %c0_i32_0 = arith.constant 0 : i32
    %c0_i32_1 = arith.constant 0 : i32
    return %c0_i32, %c0_i32_0 : i32, i32
  }
  func.func @transform_7(%arg0: i32) -> (i32, i32) {
    %c0_i32 = arith.constant 0 : i32
    %c0_i32_0 = arith.constant 0 : i32
    %c0_i32_1 = arith.constant 0 : i32
    return %c0_i32, %c0_i32_0 : i32, i32
  }
  func.func @transform_8(%arg0: i32) -> (i32, i32) {
    %c0_i32 = arith.constant 0 : i32
    %c0_i32_0 = arith.constant 0 : i32
    %c0_i32_1 = arith.constant 0 : i32
    return %c0_i32, %c0_i32_0 : i32, i32
  }
  func.func @transform_9(%arg0: i32) -> (i32, i32) {
    %c0_i32 = arith.constant 0 : i32
    %c0_i32_0 = arith.constant 0 : i32
    return %arg0, %c0_i32 : i32, i32
  }
}

</mosaic_0001>

<bundles_post_ra>
// kernel: equivariant_instance_norm.2
= control target key start
LH: loop header
LB: loop body
LE: loop exit
PB: predicated region body
PF: predicated region fallthrough
CT: control target
= control target key end

     0   :  { %s892_s15 = smov 0   ;;  %s894_s16 = smov 0   ;;  %s1253_s0 = inlined_call_operand.vmem [shape: s32[1,1000], index: 0, kind: input, shape index: {}]   ;;  %s1254_s1 = inlined_call_operand.vmem [shape: f32[1000,30], index: 1, kind: input, shape index: {}]   ;;  %s1255_s2 = inlined_call_operand.vmem [shape: f32[2,4,30], index: 2, kind: output, shape index: {0}]   ;;  %s1256_s3 = inlined_call_operand.vmem [shape: f32[2,4,30], index: 3, kind: output, shape index: {1}]   ;;  %s1257_s4 = inlined_call_operand.vmem [shape: f32[2,4,1], index: 4, kind: output, shape index: {2}]  }
   0x1   :  { %s896_s17 = smov 0   ;;  %s898_s18 = smov 0  }
   0x2   :  { %s900_s19 = smov 0  }
   0x3 LB: > { %s24_s20 = sadd.s32 1, %s854_s17  ;;  %s27_s21 = sadd.s32 1, %s858_s18  ;;  %s862_s19 = sphi %s900_s19, %s15_s19   ;;  %s858_s18 = sphi %s898_s18, %s1263_s18   ;;  %s854_s17 = sphi %s896_s17, %s1262_s17   ;;  %s850_s16 = sphi %s894_s16, %s1261_s16   ;;  %s846_s15 = sphi %s892_s15, %s1260_s15  }
   0x4   : > { %p25_p0 = scmp.ge.s32.totalorder %s24_s20, 2  ;;  %p729_p1 = scmp.ge.s32.totalorder %s862_s19, 1 }
   0x5   : > { %p214_p2 = scmp.lt.s32.totalorder %s862_s19, 5 }
   0x6   : > { %s1265_s20 = smov (%p25_p0, %s24_s20), 0  ;;  %s1267_s21 = smov (!%p25_p0, %s27_s21), %s858_s18 }
   0x7   : > { %p215_p3 = pnand %p729_p1, %p214_p2  ;;  %p29_p4 = scmp.ge.s32.totalorder %s1267_s21, 2 }
   0x8   : > { %s730_s22 = sshll.u32 (!%p215_p3), %s850_s16, 1  ;;  %p286_p5 = scmp.lt.s32.totalorder (!%p215_p3), %s850_s16, 1 }
   0x9   : > { %s1269_s21 = smov (%p29_p4, %s1267_s21), 0  ;;  %218 = sbr.rel (%p215_p3) target bundleno = 206 (0xce), region = 28 }
   0xa   : > { %s260_s23 = sadd.s32 (!%p215_p3), %s846_s15, %s730_s22  ;;  %p738_p8 = scmp.ne.s32.totalorder (!%p215_p3), %s846_s15, 0 }
   0xb   : > { %s731_s24 = sshll.u32 (!%p215_p3), %s260_s23, 1  ;;  %s733_s25 = sshll.u32 (!%p215_p3), %s260_s23, 5 }
   0xc   : > { %p262_p6 = scmp.lt.s32.totalorder (!%p215_p3), %s731_s24, 7  ;;  %p275_p7 = scmp.lt.s32.totalorder (!%p215_p3), %s733_s25, 124 }
   0xe   : > { %s1271_s16 = smov (!%p286_p5, %s850_s16), 1  ;;  %s1273_s24 = smov (!%p262_p6, %s731_s24), 7 }
   0xf   : > { %s1275_s25 = smov (!%p275_p7, %s733_s25), 124  ;;  %s264_s28 = scalar_lea.vmem %s1253_s0, %s1273_s24 }
  0x10   : > { %s735_s29 = sshll.u32 %s1271_s16, 2  ;;  %s734_s30 = sshll.u32 %s1275_s25, 3 }
  0x11   : > { %s934_s7 = scalar_lea.vmem %s1255_s2, %s735_s29  ;;  %s939_s10 = scalar_lea.vmem %s1254_s1, %s734_s30 }
  0x12   : > { %s944_s13 = scalar_lea.vmem %s1256_s3, %s735_s29  ;;  %s949_s16 = scalar_lea.vmem %s1257_s4, %s735_s29 }
  0x13   : > { %301 = sbr.rel (%p738_p8) target bundleno = 28 (0x1c), region = 32 }
  0x18   : > { %vm302_vm0 = vcmask 240640   ;;  %vm305_vm1 = vcmask 3072   ;;  %v864_v0 = vmov 0.0  }
  0x19   : > { %303 = vst.msk [vmem:[%s934_s7] sm:$0xf] %vm302_vm0, %v864_v0 }
  0x1a   : > { %304 = vst.msk [vmem:[%s944_s13] sm:$0xf] %vm302_vm0, %v864_v0 }
  0x1b   : > { %306 = vst.msk [vmem:[%s949_s16] sm:$0xf] %vm305_vm1, %v864_v0 }
  0x1c PF: > { %s740_s25 = sshll.u32 %s260_s23, 8  ;;  %v311_v1 = vlaneseq  ;;  %v392_v4 = vld [vmem:[%s939_s10 + $0x78] sm:$0xff]  ;;  %v391_v10 = vld [vmem:[%s939_s10 + $0x70] sm:$0xff]  ;;  %v390_v17 = vld [vmem:[%s939_s10 + $0x68] sm:$0xff] }
  0x1d   : > { %s310_s26 = ssub.s32 1000, %s740_s25  ;;  %v408_v5 = vld [vmem:[%s939_s10 + $0xf8] sm:$0xff]  ;;  %v407_v12 = vld [vmem:[%s939_s10 + $0xf0] sm:$0xff]  ;;  %v406_v18 = vld [vmem:[%s939_s10 + $0xe8] sm:$0xff] }
  0x1e   : > { %v955_v2 = vshrl.u32 %v311_v1, 7  ;;  %v957_v3 = vstv %s310_s26  ;;  %v961_v6 = vand.u32 127, %v311_v1  ;;  %v389_v23 = vld [vmem:[%s939_s10 + $0x60] sm:$0xff]  ;;  %v388_v37 = vld [vmem:[%s939_s10 + $0x58] sm:$0xff]  ;;  %v387_v42 = vld [vmem:[%s939_s10 + $0x50] sm:$0xff] }
  0x1f   : > { %v405_v24 = vld [vmem:[%s939_s10 + $0xe0] sm:$0xff]  ;;  %v404_v40 = vld [vmem:[%s939_s10 + $0xd8] sm:$0xff]  ;;  %v403_v44 = vld [vmem:[%s939_s10 + $0xd0] sm:$0xff] }
  0x20   : > { %v327_v7 = vadd.s32 120, %v955_v2  ;;  %v343_v8 = vadd.s32 248, %v955_v2  ;;  %v326_v9 = vadd.s32 112, %v955_v2  ;;  %v342_v11 = vadd.s32 240, %v955_v2  ;;  %v386_v53 = vld [vmem:[%s939_s10 + $0x48] sm:$0xff]  ;;  %v385_v59 = vld [vmem:[%s939_s10 + $0x40] sm:$0xff] }
  0x21   : > { %v325_v13 = vadd.s32 104, %v955_v2  ;;  %v341_v14 = vadd.s32 232, %v955_v2  ;;  %v972_v15 = vadd.s32 96, %v955_v2  ;;  %v975_v16 = vadd.s32 224, %v955_v2  ;;  %v402_v54 = vld [vmem:[%s939_s10 + $0xc8] sm:$0xff]  ;;  %v401_v60 = vld [vmem:[%s939_s10 + $0xc0] sm:$0xff] }
  0x22   : > { %vm360_vm2 = vcmp.lt.s32.totalorder %v327_v7, %v957_v3  ;;  %vm376_vm3 = vcmp.lt.s32.totalorder %v343_v8, %v957_v3  ;;  %vm359_vm4 = vcmp.lt.s32.totalorder %v326_v9, %v957_v3  ;;  %vm375_vm5 = vcmp.lt.s32.totalorder %v342_v11, %v957_v3  ;;  %v384_v1 = vld [vmem:[%s939_s10 + $0x38] sm:$0xff] }
  0x23   : > { %v424_v19 = vsel %vm360_vm2, %v392_v4, 0.0  ;;  %v440_v20 = vsel %vm376_vm3, %v408_v5, 0.0  ;;  %v423_v21 = vsel %vm359_vm4, %v391_v10, 0.0  ;;  %v439_v22 = vsel %vm375_vm5, %v407_v12, 0.0  ;;  %743 = vmatpush.msk.msra.mxu0 %vm360_vm2, %v392_v4  ;;  %760 = vmatpush.msk.msra.mxu1 %vm376_vm3, %v408_v5  ;;  %v400_v9 = vld [vmem:[%s939_s10 + $0xb8] sm:$0xff] }
  0x24   : > { %v517_v25 = vmul.f32 %v424_v19, %v424_v19  ;;  %v533_v26 = vmul.f32 %v440_v20, %v440_v20  ;;  %v516_v27 = vmul.f32 %v423_v21, %v423_v21  ;;  %v532_v28 = vmul.f32 %v439_v22, %v439_v22  ;;  %v398_v22 = vld [vmem:[%s939_s10 + $0xa8] sm:$0xff] }
  0x25   : > { %vm358_vm6 = vcmp.lt.s32.totalorder %v325_v13, %v957_v3  ;;  %vm374_vm7 = vcmp.lt.s32.totalorder %v341_v14, %v957_v3  ;;  %vm357_vm8 = vcmp.lt.s32.totalorder %v972_v15, %v957_v3  ;;  %vm373_vm9 = vcmp.lt.s32.totalorder %v975_v16, %v957_v3  ;;  %744 = vmatpush.msk.msra.mxu0 %vm359_vm4, %v391_v10  ;;  %v383_v13 = vld [vmem:[%s939_s10 + $0x30] sm:$0xff] }
  0x26   : > { %534 = vmatpush.msra.mxu2 %v517_v25  ;;  %554 = vmatpush.msra.mxu3 %v533_v26  ;;  %v422_v29 = vsel %vm358_vm6, %v390_v17, 0.0  ;;  %v438_v30 = vsel %vm374_vm7, %v406_v18, 0.0  ;;  %v421_v31 = vsel %vm357_vm8, %v389_v23, 0.0  ;;  %v437_v32 = vsel %vm373_vm9, %v405_v24, 0.0  ;;  %v399_v16 = vld [vmem:[%s939_s10 + $0xb0] sm:$0xff] }
  0x27   : > { %v515_v33 = vmul.f32 %v422_v29, %v422_v29  ;;  %v531_v34 = vmul.f32 %v438_v30, %v438_v30  ;;  %v514_v35 = vmul.f32 %v421_v31, %v421_v31  ;;  %v530_v36 = vmul.f32 %v437_v32, %v437_v32  ;;  %761 = vmatpush.msk.msra.mxu1 %vm375_vm5, %v407_v12  ;;  %v381_v32 = vld [vmem:[%s939_s10 + $0x20] sm:$0xff] }
  0x28   : > { %535 = vmatpush.msra.mxu2 %v516_v27  ;;  %555 = vmatpush.msra.mxu3 %v532_v28  ;;  %v323_v38 = vadd.s32 88, %v955_v2  ;;  %v339_v39 = vadd.s32 216, %v955_v2  ;;  %v322_v41 = vadd.s32 80, %v955_v2  ;;  %v338_v43 = vadd.s32 208, %v955_v2 }
  0x29   : > { %745 = vmatpush.msk.msra.mxu0 %vm358_vm6, %v390_v17  ;;  %762 = vmatpush.msk.msra.mxu1 %vm374_vm7, %v406_v18  ;;  %v321_v45 = vadd.s32 72, %v955_v2  ;;  %v337_v46 = vadd.s32 200, %v955_v2  ;;  %v1024_v47 = vadd.s32 64, %v955_v2  ;;  %v1027_v48 = vadd.s32 192, %v955_v2  ;;  %v382_v18 = vld [vmem:[%s939_s10 + $0x28] sm:$0xff] }
  0x2a   : > { %536 = vmatpush.msra.mxu2 %v515_v33  ;;  %556 = vmatpush.msra.mxu3 %v531_v34  ;;  %vm356_vm10 = vcmp.lt.s32.totalorder %v323_v38, %v957_v3  ;;  %vm372_vm11 = vcmp.lt.s32.totalorder %v339_v39, %v957_v3  ;;  %vm355_vm12 = vcmp.lt.s32.totalorder %v322_v41, %v957_v3  ;;  %v1033_v49 = vadd.s32 56, %v955_v2  ;;  %v396_v39 = vld [vmem:[%s939_s10 + $0x98] sm:$0xff] }
  0x2b   : > { %v420_v50 = vsel %vm356_vm10, %v388_v37, 0.0  ;;  %v436_v51 = vsel %vm372_vm11, %v404_v40, 0.0  ;;  %v419_v52 = vsel %vm355_vm12, %v387_v42, 0.0  ;;  %vm371_vm13 = vcmp.lt.s32.totalorder %v338_v43, %v957_v3  ;;  %746 = vmatpush.msk.msra.mxu0 %vm357_vm8, %v389_v23  ;;  %763 = vmatpush.msk.msra.mxu1 %vm373_vm9, %v405_v24 }
  0x2c   : > { %537 = vmatpush.msra.mxu2 %v514_v35  ;;  %557 = vmatpush.msra.mxu3 %v530_v36  ;;  %v513_v55 = vmul.f32 %v420_v50, %v420_v50  ;;  %v529_v56 = vmul.f32 %v436_v51, %v436_v51  ;;  %v512_v57 = vmul.f32 %v419_v52, %v419_v52  ;;  %v435_v58 = vsel %vm371_vm13, %v403_v44, 0.0  ;;  %v397_v35 = vld [vmem:[%s939_s10 + $0xa0] sm:$0xff]  ;;  %v378_v50 = vld [vmem:[%s939_s10 + $0x8] sm:$0xff] }
  0x2d   : > { %v528_v61 = vmul.f32 %v435_v58, %v435_v58  ;;  %vm354_vm14 = vcmp.lt.s32.totalorder %v321_v45, %v957_v3  ;;  %vm370_vm15 = vcmp.lt.s32.totalorder %v337_v46, %v957_v3  ;;  %747 = vmatpush.msk.msra.mxu0 %vm356_vm10, %v388_v37  ;;  %764 = vmatpush.msk.msra.mxu1 %vm372_vm11, %v404_v40  ;;  %v335_v62 = vadd.s32 184, %v955_v2  ;;  %v380_v37 = vld [vmem:[%s939_s10 + $0x18] sm:$0xff] }
  0x2e   : > { %538 = vmatpush.msra.mxu2 %v513_v55  ;;  %558 = vmatpush.msra.mxu3 %v529_v56  ;;  %v418_v63 = vsel %vm354_vm14, %v386_v53, 0.0  ;;  %v434_v0 = vsel %vm370_vm15, %v402_v54, 0.0  ;;  %vm353_vm0 = vcmp.lt.s32.totalorder %v1024_v47, %v957_v3  ;;  %vm369_vm1 = vcmp.lt.s32.totalorder %v1027_v48, %v957_v3  ;;  %v379_v48 = vld [vmem:[%s939_s10 + $0x10] sm:$0xff]  ;;  %v394_v55 = vld [vmem:[%s939_s10 + $0x88] sm:$0xff] }
  0x2f   : > { %v511_v4 = vmul.f32 %v418_v63, %v418_v63  ;;  %v527_v5 = vmul.f32 %v434_v0, %v434_v0  ;;  %v417_v7 = vsel %vm353_vm0, %v385_v59, 0.0  ;;  %v433_v8 = vsel %vm369_vm1, %v401_v60, 0.0  ;;  %748 = vmatpush.msk.msra.mxu0 %vm355_vm12, %v387_v42  ;;  %765 = vmatpush.msk.msra.mxu1 %vm371_vm13, %v403_v44 }
  0x30   : > { %539 = vmatpush.msra.mxu2 %v512_v57  ;;  %559 = vmatpush.msra.mxu3 %v528_v61  ;;  %v510_v10 = vmul.f32 %v417_v7, %v417_v7  ;;  %v526_v11 = vmul.f32 %v433_v8, %v433_v8  ;;  %vm352_vm2 = vcmp.lt.s32.totalorder %v1033_v49, %v957_v3  ;;  %v318_v12 = vadd.s32 48, %v955_v2  ;;  %v395_v49 = vld [vmem:[%s939_s10 + $0x90] sm:$0xff]  ;;  %v441_v57 = vld [vmem:[%s264_s28] sm:$0x3] }
  0x31   : > { %v416_v14 = vsel %vm352_vm2, %v384_v1, 0.0  ;;  %vm368_vm3 = vcmp.lt.s32.totalorder %v335_v62, %v957_v3  ;;  %749 = vmatpush.msk.msra.mxu0 %vm354_vm14, %v386_v53  ;;  %766 = vmatpush.msk.msra.mxu1 %vm370_vm15, %v402_v54  ;;  %v334_v15 = vadd.s32 176, %v955_v2  ;;  %v317_v17 = vadd.s32 40, %v955_v2  ;;  %v377_v61 = vld [vmem:[%s939_s10] sm:$0xff] }
  0x32   : > { %540 = vmatpush.msra.mxu2 %v511_v4  ;;  %560 = vmatpush.msra.mxu3 %v527_v5  ;;  %v509_v19 = vmul.f32 %v416_v14, %v416_v14  ;;  %v432_v20 = vsel %vm368_vm3, %v400_v9, 0.0  ;;  %vm351_vm4 = vcmp.lt.s32.totalorder %v318_v12, %v957_v3  ;;  %v333_v21 = vadd.s32 168, %v955_v2  ;;  %v393_v62 = vld [vmem:[%s939_s10 + $0x80] sm:$0xff] }
  0x33   : > { %v525_v23 = vmul.f32 %v432_v20, %v432_v20  ;;  %v415_v24 = vsel %vm351_vm4, %v383_v13, 0.0  ;;  %vm367_vm5 = vcmp.lt.s32.totalorder %v334_v15, %v957_v3  ;;  %750 = vmatpush.msk.msra.mxu0 %vm353_vm0, %v385_v59  ;;  %767 = vmatpush.msk.msra.mxu1 %vm369_vm1, %v401_v60  ;;  %vm350_vm6 = vcmp.lt.s32.totalorder %v317_v17, %v957_v3 }
  0x34   : > { %541 = vmatpush.msra.mxu2 %v510_v10  ;;  %561 = vmatpush.msra.mxu3 %v526_v11  ;;  %v508_v25 = vmul.f32 %v415_v24, %v415_v24  ;;  %v431_v26 = vsel %vm367_vm5, %v399_v16, 0.0  ;;  %v414_v27 = vsel %vm350_vm6, %v382_v18, 0.0  ;;  %vm366_vm7 = vcmp.lt.s32.totalorder %v333_v21, %v957_v3 }
  0x35   : > { %v524_v28 = vmul.f32 %v431_v26, %v431_v26  ;;  %v507_v29 = vmul.f32 %v414_v27, %v414_v27  ;;  %v430_v30 = vsel %vm366_vm7, %v398_v22, 0.0  ;;  %751 = vmatpush.msk.msra.mxu0 %vm352_vm2, %v384_v1  ;;  %768 = vmatpush.msk.msra.mxu1 %vm368_vm3, %v400_v9  ;;  %v316_v31 = vadd.s32 32, %v955_v2 }
  0x36   : > { %542 = vmatpush.msra.mxu2 %v509_v19  ;;  %562 = vmatpush.msra.mxu3 %v525_v23  ;;  %v523_v33 = vmul.f32 %v430_v30, %v430_v30  ;;  %v332_v34 = vadd.s32 160, %v955_v2  ;;  %v315_v36 = vadd.s32 24, %v955_v2  ;;  %v331_v38 = vadd.s32 152, %v955_v2  ;;  %v576_v19 = vld [vmem:[%s949_s16] sm:$0xf] }
  0x37   : > { %vm349_vm8 = vcmp.lt.s32.totalorder %v316_v31, %v957_v3  ;;  %752 = vmatpush.msk.msra.mxu0 %vm351_vm4, %v383_v13  ;;  %769 = vmatpush.msk.msra.mxu1 %vm367_vm5, %v399_v16  ;;  %v314_v40 = vadd.s32 16, %v955_v2  ;;  %v330_v41 = vadd.s32 144, %v955_v2  ;;  %v1140_v42 = vadd.s32 8, %v955_v2  ;;  %v457_v23 = vld [vmem:[%s934_s7] sm:$0xf] }
  0x38   : > { %543 = vmatpush.msra.mxu2 %v508_v25  ;;  %563 = vmatpush.msra.mxu3 %v524_v28  ;;  %v413_v43 = vsel %vm349_vm8, %v381_v32, 0.0  ;;  %vm365_vm9 = vcmp.lt.s32.totalorder %v332_v34, %v957_v3  ;;  %vm348_vm10 = vcmp.lt.s32.totalorder %v315_v36, %v957_v3  ;;  %vm364_vm11 = vcmp.lt.s32.totalorder %v331_v38, %v957_v3  ;;  %v501_v28 = vld [vmem:[%s944_s13] sm:$0xf] }
  0x39   : > { %v506_v44 = vmul.f32 %v413_v43, %v413_v43  ;;  %v429_v45 = vsel %vm365_vm9, %v397_v35, 0.0  ;;  %v412_v46 = vsel %vm348_vm10, %v380_v37, 0.0  ;;  %v428_v47 = vsel %vm364_vm11, %v396_v39, 0.0  ;;  %753 = vmatpush.msk.msra.mxu0 %vm350_vm6, %v382_v18  ;;  %770 = vmatpush.msk.msra.mxu1 %vm366_vm7, %v398_v22 }
  0x3a   : > { %544 = vmatpush.msra.mxu2 %v507_v29  ;;  %564 = vmatpush.msra.mxu3 %v523_v33  ;;  %v522_v51 = vmul.f32 %v429_v45, %v429_v45  ;;  %v505_v52 = vmul.f32 %v412_v46, %v412_v46  ;;  %v521_v53 = vmul.f32 %v428_v47, %v428_v47  ;;  %v329_v54 = vadd.s32 136, %v955_v2 }
  0x3b   : > { %vm347_vm12 = vcmp.lt.s32.totalorder %v314_v40, %v957_v3  ;;  %vm363_vm13 = vcmp.lt.s32.totalorder %v330_v41, %v957_v3  ;;  %754 = vmatpush.msk.msra.mxu0 %vm349_vm8, %v381_v32  ;;  %771 = vmatpush.msk.msra.mxu1 %vm365_vm9, %v397_v35  ;;  %vm346_vm14 = vcmp.lt.s32.totalorder %v1140_v42, %v957_v3  ;;  %v328_v56 = vadd.s32 128, %v955_v2 }
  0x3c   : > { %545 = vmatpush.msra.mxu2 %v506_v44  ;;  %565 = vmatpush.msra.mxu3 %v522_v51  ;;  %v411_v58 = vsel %vm347_vm12, %v379_v48, 0.0  ;;  %v427_v59 = vsel %vm363_vm13, %v395_v49, 0.0  ;;  %v410_v60 = vsel %vm346_vm14, %v378_v50, 0.0  ;;  %vm362_vm15 = vcmp.lt.s32.totalorder %v329_v54, %v957_v3 }
  0x3d   : > { %v504_v63 = vmul.f32 %v411_v58, %v411_v58  ;;  %v520_v0 = vmul.f32 %v427_v59, %v427_v59  ;;  %v503_v1 = vmul.f32 %v410_v60, %v410_v60  ;;  %v426_v4 = vsel %vm362_vm15, %v394_v55, 0.0  ;;  %755 = vmatpush.msk.msra.mxu0 %vm348_vm10, %v380_v37  ;;  %772 = vmatpush.msk.msra.mxu1 %vm364_vm11, %v396_v39 }
  0x3e   : > { %546 = vmatpush.msra.mxu2 %v505_v52  ;;  %566 = vmatpush.msra.mxu3 %v521_v53  ;;  %v519_v5 = vmul.f32 %v426_v4, %v426_v4  ;;  %vm345_vm0 = vcmp.lt.s32.totalorder %v955_v2, %v957_v3  ;;  %vm361_vm1 = vcmp.lt.s32.totalorder %v328_v56, %v957_v3  ;;  %v445_v7 = vperm.slane %v441_v57, 0 }
  0x3f   : > { %v409_v8 = vsel %vm345_vm0, %v377_v61, 0.0  ;;  %v425_v9 = vsel %vm361_vm1, %v393_v62, 0.0  ;;  %vm449_vm2 = vcmp.lt.s32.totalorder %v961_v6, %v957_v3  ;;  %756 = vmatpush.msk.msra.mxu0 %vm347_vm12, %v379_v48  ;;  %773 = vmatpush.msk.msra.mxu1 %vm363_vm13, %v395_v49  ;;  %v444_v12 = vadd.s32 128, %v961_v6 }
  0x40   : > { %547 = vmatpush.msra.mxu2 %v504_v63  ;;  %567 = vmatpush.msra.mxu3 %v520_v0  ;;  %v502_v10 = vmul.f32 %v409_v8, %v409_v8  ;;  %v518_v11 = vmul.f32 %v425_v9, %v425_v9  ;;  %vm447_vm3 = vcmp.eq.s32.totalorder %v955_v2, %v445_v7  ;;  %v446_v14 = vperm.slane %v441_v57, 1 }
  0x41   : > { %vm1208_vm4 = vmand %vm447_vm3, %vm449_vm2  ;;  %757 = vmatpush.msk.msra.mxu0 %vm346_vm14, %v378_v50  ;;  %774 = vmatpush.msk.msra.mxu1 %vm362_vm15, %v394_v55  ;;  %vm577_vm5 = vcmask 1043456   ;;  %vm450_vm6 = vcmp.lt.s32.totalorder %v444_v12, %v957_v3  ;;  %v865_v15 = vmov 0.0   ;;  %v866_v17 = vmov 1.0  }
  0x42   : > { %548 = vmatpush.msra.mxu2 %v503_v1  ;;  %568 = vmatpush.msra.mxu3 %v519_v5  ;;  %v741_v6 = vsel %vm1208_vm4, 1.0, %v865_v15  ;;  %vm448_vm7 = vcmp.eq.s32.totalorder %v955_v2, %v446_v14  ;;  %vm584_vm9 = vcmask 3072   ;;  %vm499_vm10 = vcmask 240640  }
  0x43   : > { %758 = vmatpush.msk.msra.mxu0 %vm345_vm0, %v377_v61  ;;  %775 = vmatpush.msk.msra.mxu1 %vm361_vm1, %v393_v62  ;;  %vm452_vm8 = vmand %vm448_vm7, %vm450_vm6  ;;  %v578_v16 = vsel %vm577_vm5, %v741_v6, 0.0 }
  0x44   : > { %549 = vmatpush.msra.mxu2 %v502_v10  ;;  %569 = vmatpush.msra.mxu3 %v518_v11  ;;  %v742_v18 = vsel %vm452_vm8, 1.0, %v865_v15 }
  0x45   : > { %777 = vmatmul.msk.f32.vlgmr.msra.gmra.mxu2 %vm1208_vm4, %v866_v17  ;;  %778 = vmatmul.msk.f32.vlgmr.msra.gmra.mxu3 %vm452_vm8, %v866_v17  ;;  %v579_v2 = vsel %vm577_vm5, %v742_v18, 0.0 }
  0x46   : > { %759 = vmatmul.msk.f32.vlgmr.msra.gmra.mxu0 %vm1208_vm4, %v866_v17  ;;  %776 = vmatmul.msk.f32.vlgmr.msra.gmra.mxu1 %vm452_vm8, %v866_v17  ;;  %v580_v3 = vadd.f32 %v579_v2, %v578_v16 }
  0x48   : > { %581 = vadd.xlane.f32.xlu0 %v580_v3 }
  0xbb   : > { %v582_v20 = vpop.xlane.xlu0 %581 }
  0xbc   : > { %v583_v21 = vadd.f32 %v582_v20, %v576_v19 }
  0xbe   : > { %585 = vst.msk [vmem:[%s949_s16] sm:$0xf] %vm584_vm9, %v583_v21 }
  0xc3   : > { %v475_v22 = vpop.f32.mrf.mxu0  ;;  %v495_v24 = vpop.f32.mrf.mxu1 }
  0xc4   : > { %v496_v25 = vadd.f32 %v495_v24, %v475_v22 }
  0xc6   : > { %v498_v26 = vadd.f32 %v496_v25, %v457_v23 }
  0xc8   : > { %500 = vst.msk [vmem:[%s934_s7] sm:$0xf] %vm499_vm10, %v498_v26  ;;  %v551_v27 = vpop.f32.mrf.mxu2  ;;  %v571_v29 = vpop.f32.mrf.mxu3 }
  0xc9   : > { %v572_v30 = vadd.f32 %v571_v29, %v551_v27 }
  0xcb   : > { %v574_v31 = vadd.f32 %v572_v30, %v501_v28 }
  0xcd   : > { %575 = vst.msk [vmem:[%s944_s13] sm:$0xf] %vm499_vm10, %v574_v31 }
  0xce PF: > { %s15_s19 = sadd.s32 1, %s862_s19   ;;  %s1260_s15 = smov %s854_s17 }
  0xcf   : > { %p12_p9 = scmp.ge.s32.totalorder %s15_s19, 6   ;;  %s1261_s16 = smov %s858_s18 }
  0xd0   : > { %s1262_s17 = smov %s1265_s20  ;;  %s1263_s18 = smov %s1269_s21 }
  0xd1   :  { %14 = sbr.rel (!%p12_p9) target bundleno = 3 (0x3), region = 89 }

// kernel: equivariant_instance_norm.3
= control target key start
LH: loop header
LB: loop body
LE: loop exit
PB: predicated region body
PF: predicated region fallthrough
CT: control target
= control target key end

     0   :  { %s1952_s30 = smov 0   ;;  %s1954_s10 = smov 0   ;;  %s2475_s0 = inlined_call_operand.vmem [shape: s32[1000,1], index: 0, kind: input, shape index: {}]   ;;  %s2476_s1 = inlined_call_operand.vmem [shape: f32[1000,30], index: 1, kind: input, shape index: {}]   ;;  %s2477_s2 = inlined_call_operand.vmem [shape: f32[2,4,30], index: 2, kind: input, shape index: {}]   ;;  %s2478_s3 = inlined_call_operand.vmem [shape: f32[2,4,30], index: 3, kind: input, shape index: {}]   ;;  %s2479_s4 = inlined_call_operand.vmem [shape: f32[2,4,1], index: 4, kind: input, shape index: {}]   ;;  %s2480_s5 = inlined_call_operand.vmem [shape: f32[30,14], index: 5, kind: input, shape index: {}]   ;;  %s2481_s6 = inlined_call_operand.vmem [shape: f32[14,30], index: 6, kind: input, shape index: {}]   ;;  %s2482_s7 = inlined_call_operand.vmem [shape: f32[2,14], index: 7, kind: input, shape index: {}]   ;;  %s2483_s8 = inlined_call_operand.vmem [shape: f32[2,30], index: 8, kind: input, shape index: {}]   ;;  %s2484_s9 = inlined_call_operand.vmem [shape: f32[1000,30], index: 9, kind: output, shape index: {}]  }
   0x1   :  { %s1956_s11 = smov 0  }
   0x2 LB: > { %s1965_s12 = sadd.s32 4294967295, %s1866_s11   ;;  %s1967_s13 = sadd.s32 1, %s1866_s11   ;;  %s1866_s11 = sphi %s1956_s11, %s2493_s11   ;;  %s1862_s10 = sphi %s1954_s10, %s2492_s10   ;;  %s1858_s30 = sphi %s1952_s30, %s2491_s30  }
   0x3   : > { %s222_s14 = ssub.s32 %s1866_s11, %s1967_s13  ;;  %s225_s15 = sadd.s32 1, %s1862_s10 }
   0x4   : > { %p223_p0 = scmp.eq.s32.totalorder %s222_s14, 0  ;;  %p235_p1 = scmp.ne.s32.totalorder %s1862_s10, %s1858_s30 }
   0x5   : > { %p236_p2 = scmp.eq.s32.totalorder %s1965_s12, 3  ;;  %p1583_p3 = scmp.ge.s32.totalorder %s1866_s11, 1 }
   0x6   : > { %s1975_s16 = scalar_select %p223_p0, %s1862_s10, %s225_s15  }
   0x7   : > { %p1977_p4 = por %p236_p2, %p235_p1  ;;  %p315_p5 = scmp.lt.s32.totalorder %s1866_s11, 5 }
   0x9   : > { %p316_p6 = pnand %p1583_p3, %p315_p5 }
   0xa   : > { %s1988_s22 = sshll.u32 (!%p316_p6), %s1965_s12, 5  ;;  %s360_s15 = sand.u32 (!%p316_p6), 1, %s1858_s30  }
   0xb   : > { %319 = sbr.rel (%p316_p6) target bundleno = 780 (0x30c), region = 56  ;;  %p368_p7 = scmp.lt.s32.totalorder (!%p316_p6), %s1988_s22, 124 }
  0x10   : > { %v396_v0 = vld [vmem:[%s2479_s4] sm:$0xf]  ;;  %v397_v1 = vld [vmem:[%s2479_s4 + $0x4] sm:$0xf]  ;;  %vm398_vm0 = vcmask 3072   ;;  %v1900_v2 = vmov 0  }
  0x11   : > { %1805 = vset.pattern.permute.xlu0 %v1900_v2  ;;  %v399_v3 = vsel %vm398_vm0, %v396_v0, 0.0  ;;  %v400_v4 = vsel %vm398_vm0, %v397_v1, 0.0  ;;  %1806 = vset.pattern.permute.xlu1 %v1900_v2  ;;  %s1992_s23 = scalar_select %p368_p7, %s1988_s22, 124  ;;  %v439_v23 = vld [vmem:[%s2480_s5 + $0x18] sm:$0x3f]  ;;  %vm444_vm5 = vcmask 1045504  }
  0x12   : > { %v401_v5 = vadd.f32 %v400_v4, %v399_v3  ;;  %1807 = vset.pattern.permute.xlu2 %v1900_v2  ;;  %v438_v24 = vld [vmem:[%s2480_s5 + $0x10] sm:$0xff]  ;;  %1589 = vmatpush.msk.msra.mxu0 %vm444_vm5, %v439_v23  ;;  %v437_v25 = vld [vmem:[%s2480_s5 + $0x8] sm:$0xff]  ;;  %v436_v30 = vld [vmem:[%s2480_s5] sm:$0xff]  ;;  %vm420_vm6 = vcmask 240640   ;;  %vm440_vm7 = vcmask 244736   ;;  %vm511_vm11 = vcmask 113664  }
  0x13   : > { %s1586_s24 = sshll.u32 %s1992_s23, 3  ;;  %1591 = vmatpush.msk.msra.mxu1 %vm444_vm5, %v439_v23  ;;  %v418_v31 = vld [vmem:[%s2477_s2] sm:$0xf]  ;;  %v419_v32 = vld [vmem:[%s2477_s2 + $0x4] sm:$0xf]  ;;  %vm867_vm14 = vcmask 1043456  }
  0x14   : > { %v402_v6 = vmax.f32 %v401_v5, 1.0  ;;  %s2000_s27 = scalar_lea.vmem %s2475_s0, %s1586_s24  ;;  %461 = vmatpush.msra.mxu0 %v438_v24  ;;  %v430_v33 = vld [vmem:[%s2478_s3] sm:$0xf]  ;;  %v431_v34 = vld [vmem:[%s2478_s3 + $0x4] sm:$0xf]  ;;  %v421_v35 = vsel %vm420_vm6, %v418_v31, 0.0  ;;  %s2220_s14 = scalar_lea.vmem %s2476_s1, %s1586_s24 }
  0x15   : > { %v558_v17 = vld [vmem:[%s2000_s27 + $0x70] sm:$0xff]  ;;  %v545_v18 = vld [vmem:[%s2000_s27 + $0x8] sm:$0xff]  ;;  %v563_v19 = vld [vmem:[%s2000_s27 + $0x98] sm:$0xff]  ;;  %484 = vmatpush.msra.mxu1 %v438_v24  ;;  %v422_v36 = vsel %vm420_vm6, %v419_v32, 0.0  ;;  %v432_v37 = vsel %vm420_vm6, %v430_v33, 0.0  ;;  %v433_v38 = vsel %vm420_vm6, %v431_v34, 0.0 }
  0x16   : > { %1808 = vrcp.f32 %v402_v6  ;;  %v414_v9 = vand.u32 2147483648, %v402_v6  ;;  %vm408_vm1 = vweird.f32 %v402_v6  ;;  %v412_v11 = vand.u32 2147483647, %v402_v6  ;;  %v548_v20 = vld [vmem:[%s2000_s27 + $0x20] sm:$0xff]  ;;  %v566_v21 = vld [vmem:[%s2000_s27 + $0xb0] sm:$0xff]  ;;  %v551_v22 = vld [vmem:[%s2000_s27 + $0x38] sm:$0xff]  ;;  %462 = vmatpush.msra.mxu0 %v437_v25 }
  0x17   : > { %v569_v26 = vld [vmem:[%s2000_s27 + $0xc8] sm:$0xff]  ;;  %485 = vmatpush.msra.mxu1 %v437_v25  ;;  %v554_v27 = vld [vmem:[%s2000_s27 + $0x50] sm:$0xff]  ;;  %v572_v28 = vld [vmem:[%s2000_s27 + $0xe0] sm:$0xff]  ;;  %v423_v39 = vadd.f32 %v422_v36, %v421_v35  ;;  %v434_v40 = vadd.f32 %v433_v38, %v432_v37  ;;  %vm770_vm15 = vcmask 31744   ;;  %s1584_s23 = sshll.u32 %s360_s15, 8  ;;  %s1236_s30 = ssub.s32 (%p1977_p4), 125, %s1988_s22 }
  0x18   : > { %v415_v13 = vor.u32 1.1754944e-38, %v414_v9  ;;  %vm413_vm4 = vcmp.eq.f32.partialorder %v412_v11, 8.507059e+37  ;;  %v557_v29 = vld [vmem:[%s2000_s27 + $0x68] sm:$0xff]  ;;  %463 = vmatpush.msra.mxu0 %v436_v30  ;;  %v559_v44 = vld [vmem:[%s2000_s27 + $0x78] sm:$0xff]  ;;  %v560_v45 = vld [vmem:[%s2000_s27 + $0x80] sm:$0xff]  ;;  %s2231_s24 = scalar_lea.vmem [#allocation2], %s1584_s23  }
  0x19   : > { %486 = vmatpush.msra.mxu1 %v436_v30  ;;  %624 = vperm.xlu1 %1806, %v559_v44   ;;  %v562_v46 = vld [vmem:[%s2000_s27 + $0x90] sm:$0xff]  ;;  %v547_v47 = vld [vmem:[%s2000_s27 + $0x18] sm:$0xff]  ;;  %v565_v48 = vld [vmem:[%s2000_s27 + $0xa8] sm:$0xff]  ;;  %v1901_v30 = vmov 0.0   ;;  %s1710_s18 = sshll.u32 (%p1977_p4), %s1965_s12, 8  ;;  %p1237_p8 = scmp.lt.s32.totalorder (%p1977_p4), %s1236_s30, 32 }
  0x1a   : > { %v544_v49 = vld [vmem:[%s2000_s27] sm:$0xff]  ;;  %v550_v50 = vld [vmem:[%s2000_s27 + $0x30] sm:$0xff]  ;;  %v561_v51 = vld [vmem:[%s2000_s27 + $0x88] sm:$0xff]  ;;  %s2340_s21 = scalar_lea.vmem (%p1977_p4), %s2484_s9, %s1710_s18  }
  0x1b   : > { %579 = vperm.xlu2 %1807, %v544_v49   ;;  %v568_v52 = vld [vmem:[%s2000_s27 + $0xc0] sm:$0xff]  ;;  %v546_v53 = vld [vmem:[%s2000_s27 + $0x10] sm:$0xff]  ;;  %v510_v54 = vld [vmem:[%s2481_s6 + $0x8] sm:$0x3f] }
  0x1c   : > { %v1809_v7 = vpop.eup %1808  ;;  %v509_v55 = vld [vmem:[%s2481_s6] sm:$0xff]  ;;  %1593 = vmatpush.msk.msra.mxu2 %vm444_vm5, %v510_v54  ;;  %v553_v57 = vld [vmem:[%s2000_s27 + $0x48] sm:$0xff]  ;;  %v571_v62 = vld [vmem:[%s2000_s27 + $0xd8] sm:$0xff] }
  0x1d   : > { %v404_v8 = vmul.f32 %v1809_v7, %v402_v6  ;;  %vm409_vm2 = vweird.f32 %v1809_v7  ;;  %v491_v56 = vld [vmem:[%s2482_s7] sm:$0x3]  ;;  %v549_v63 = vld [vmem:[%s2000_s27 + $0x28] sm:$0xff]  ;;  %v567_v5 = vld [vmem:[%s2000_s27 + $0xb8] sm:$0xff] }
  0x1e   : > { %vm410_vm3 = vmor %vm408_vm1, %vm409_vm2  ;;  %533 = vmatpush.msra.mxu2 %v509_v55  ;;  %v564_v58 = vld [vmem:[%s2000_s27 + $0xa0] sm:$0xff]  ;;  %v492_v59 = vperm.slane %v491_v56, 0  ;;  %v574_v9 = vld [vmem:[%s2000_s27 + $0xf0] sm:$0xff] }
  0x1f   : > { %v405_v10 = vsub.f32 1.0, %v404_v8  ;;  %v556_v4 = vld [vmem:[%s2000_s27 + $0x60] sm:$0xff] }
  0x20   : > { %v538_v24 = vld [vmem:[%s2483_s8] sm:$0x3] }
  0x21   : > { %v406_v12 = vmul.f32 %v1809_v7, %v405_v10  ;;  %627 = vperm.xlu1 %1806, %v560_v45   ;;  %v552_v10 = vld [vmem:[%s2000_s27 + $0x40] sm:$0xff]  ;;  %v542_v32 = vperm.slane %v538_v24, 1 }
  0x23   : > { %v407_v14 = vadd.f32 %v1809_v7, %v406_v12  ;;  %630 = vperm.xlu2 %1807, %v561_v51  }
  0x25   : > { %v411_v15 = vsel %vm410_vm3, %v1809_v7, %v407_v14 }
  0x26   : > { %v416_v16 = vsel %vm413_vm4, %v415_v13, %v411_v15  ;;  %v507_v13 = vperm.slane %v491_v56, 1 }
  0x27   : > { %426 = vperm.xlu0 %1805, %v416_v16   ;;  %v570_v16 = vld [vmem:[%s2000_s27 + $0xd0] sm:$0xff] }
  0x29   : > { %633 = vperm.xlu1 %1806, %v562_v46  }
  0x2b   : > { %585 = vperm.xlu2 %1807, %v546_v53  }
  0x2f   : > { %621 = vperm.xlu0 %1805, %v558_v17  }
  0x31   : > { %588 = vperm.xlu1 %1806, %v547_v47  }
  0x33   : > { %639 = vperm.xlu2 %1807, %v564_v58  }
  0x37   : > { %582 = vperm.xlu0 %1805, %v545_v18   ;;  %v555_v18 = vld [vmem:[%s2000_s27 + $0x58] sm:$0xff] }
  0x39   : > { %642 = vperm.xlu1 %1806, %v565_v48  }
  0x3b   : > { %594 = vperm.xlu2 %1807, %v549_v63  }
  0x3f   : > { %636 = vperm.xlu0 %1805, %v563_v19   ;;  %v573_v19 = vld [vmem:[%s2000_s27 + $0xe8] sm:$0xff] }
  0x41   : > { %597 = vperm.xlu1 %1806, %v550_v50  }
  0x43   : > { %648 = vperm.xlu2 %1807, %v567_v5  }
  0x47   : > { %591 = vperm.xlu0 %1805, %v548_v20   ;;  %v575_v20 = vld [vmem:[%s2000_s27 + $0xf8] sm:$0xff] }
  0x49   : > { %651 = vperm.xlu1 %1806, %v568_v52  }
  0x4b   : > { %603 = vperm.xlu2 %1807, %v552_v10  }
  0x4f   : > { %645 = vperm.xlu0 %1805, %v566_v21  }
  0x51   : > { %606 = vperm.xlu1 %1806, %v553_v57  }
  0x53   : > { %657 = vperm.xlu2 %1807, %v570_v16  }
  0x57   : > { %600 = vperm.xlu0 %1805, %v551_v22   ;;  %v576_v22 = vlaneseq }
  0x59   : > { %660 = vperm.xlu1 %1806, %v571_v62  }
  0x5b   : > { %612 = vperm.xlu2 %1807, %v555_v18  }
  0x5f   : > { %654 = vperm.xlu0 %1805, %v569_v26   ;;  %v2078_v26 = vand.u32 127, %v576_v22 }
  0x61   : > { %615 = vperm.xlu1 %1806, %v556_v4  }
  0x63   : > { %666 = vperm.xlu2 %1807, %v573_v19  }
  0x67   : > { %609 = vperm.xlu0 %1805, %v554_v27   ;;  %v539_v27 = vperm.slane %v538_v24, 0 }
  0x69   : > { %669 = vperm.xlu1 %1806, %v574_v9  }
  0x6b   : > { %672 = vperm.xlu2 %1807, %v575_v20  }
  0x6f   : > { %663 = vperm.xlu0 %1805, %v572_v28  }
  0x75   : > { %v580_v23 = vpop.permute.xlu2 %579 }
  0x76   : > { %vm674_vm12 = vcmp.eq.s32.totalorder %v2078_v26, %v580_v23 }
  0x77   : > { %618 = vperm.xlu0 %1805, %v557_v29   ;;  %v1595_v31 = vsel %vm674_vm12, 1.0, %v1901_v30 }
  0x7d   : > { %v631_v35 = vpop.permute.xlu2 %630 }
  0x7e   : > { %vm691_vm3 = vcmp.eq.s32.totalorder %v2078_v26, %v631_v35 }
  0x85   : > { %v586_v44 = vpop.permute.xlu2 %585 }
  0x86   : > { %vm676_vm4 = vcmp.eq.s32.totalorder %v2078_v26, %v586_v44 }
  0x87   : > { %v1597_v45 = vsel %vm676_vm4, 1.0, %v1901_v30 }
  0x8b   : > { %v625_v21 = vpop.permute.xlu1 %624 }
  0x8c   : > { %vm689_vm1 = vcmp.eq.s32.totalorder %v2078_v26, %v625_v21 }
  0x8d   : > { %v640_v51 = vpop.permute.xlu2 %639 }
  0x93   : > { %v628_v29 = vpop.permute.xlu1 %627 }
  0x94   : > { %vm690_vm0 = vcmp.eq.s32.totalorder %v2078_v26, %v628_v29 }
  0x95   : > { %v1611_v38 = vsel %vm690_vm0, 1.0, %v1901_v30  ;;  %v595_v56 = vpop.permute.xlu2 %594 }
  0x99   : > { %v427_v41 = vpop.permute.xlu0 %426 }
  0x9a   : > { %v2038_v42 = vmul.f32 %v427_v41, %v423_v39  ;;  %v435_v43 = vmul.f32 %v434_v40, %v427_v41  ;;  %v2101_v40 = vsel %vm689_vm1, 1.0, %v1901_v30 }
  0x9c   : > { %1590 = vmatmul.msk.f32.vlgmr.msra.gmra.mxu0 %vm440_vm7, %v435_v43  ;;  %1592 = vmatmul.msk.f32.vlgmr.msra.gmra.mxu1 %vm440_vm7, %v2038_v42  ;;  %v540_v28 = vmul.f32 %v539_v27, %v2038_v42  ;;  %v634_v42 = vpop.permute.xlu1 %633  ;;  %v1612_v43 = vsel %vm691_vm3, 1.0, %v1901_v30 }
  0x9d   : > { %vm692_vm5 = vcmp.eq.s32.totalorder %v2078_v26, %v634_v42  ;;  %v649_v63 = vpop.permute.xlu2 %648 }
  0x9e   : > { %v1613_v47 = vsel %vm692_vm5, 1.0, %v1901_v30  ;;  %vm697_vm1 = vcmp.eq.s32.totalorder %v2078_v26, %v649_v63 }
  0xa1   : > { %v622_v25 = vpop.permute.xlu0 %621 }
  0xa2   : > { %vm688_vm13 = vcmp.eq.s32.totalorder %v2078_v26, %v622_v25 }
  0xa3   : > { %v2086_v34 = vsel %vm688_vm13, 1.0, %v1901_v30 }
  0xa4   : > { %v589_v48 = vpop.permute.xlu1 %588 }
  0xa5   : > { %vm677_vm6 = vcmp.eq.s32.totalorder %v2078_v26, %v589_v48  ;;  %v604_v4 = vpop.permute.xlu2 %603 }
  0xa6   : > { %v1598_v49 = vsel %vm677_vm6, 1.0, %v1901_v30 }
  0xa9   : > { %v583_v37 = vpop.permute.xlu0 %582 }
  0xaa   : > { %vm675_vm2 = vcmp.eq.s32.totalorder %v2078_v26, %v583_v37 }
  0xab   : > { %v1596_v41 = vsel %vm675_vm2, 1.0, %v1901_v30  ;;  %vm682_vm2 = vcmp.eq.s32.totalorder %v2078_v26, %v604_v4 }
  0xac   : > { %v643_v54 = vpop.permute.xlu1 %642 }
  0xad   : > { %vm695_vm12 = vcmp.eq.s32.totalorder %v2078_v26, %v643_v54  ;;  %v1103_v54 = vld [vmem:[%s2220_s14 + $0x18] sm:$0xff] }
  0xb1   : > { %v637_v46 = vpop.permute.xlu0 %636 }
  0xb9   : > { %v592_v50 = vpop.permute.xlu0 %591 }
  0xc1   : > { %v646_v57 = vpop.permute.xlu0 %645 }
  0xc9   : > { %v601_v62 = vpop.permute.xlu0 %600 }
  0xca   : > { %vm681_vm0 = vcmp.eq.s32.totalorder %v2078_v26, %v601_v62 }
  0xd1   : > { %v655_v5 = vpop.permute.xlu0 %654 }
  0xd2   : > { %vm699_vm5 = vcmp.eq.s32.totalorder %v2078_v26, %v655_v5  ;;  %v1118_v5 = vld [vmem:[%s2220_s14 + $0x90] sm:$0xff] }
  0xd9   : > { %v610_v10 = vpop.permute.xlu0 %609 }
  0xda   : > { %vm684_vm6 = vcmp.eq.s32.totalorder %v2078_v26, %v610_v10  ;;  %v1105_v10 = vld [vmem:[%s2220_s14 + $0x28] sm:$0xff] }
 0x119   : > { %v488_v60 = vpop.f32.mrf.mxu1  ;;  %v465_v1 = vpop.f32.mrf.mxu0 }
 0x11a   : > { %v493_v61 = vmul.f32 %v492_v59, %v488_v60  ;;  %v1616_v59 = vsel %vm695_vm12, 1.0, %v1901_v30 }
 0x11c   : > { %v494_v0 = vmul.f32 %v493_v61, %v488_v60  ;;  %v598_v60 = vpop.permute.xlu1 %597 }
 0x11d   : > { %vm680_vm13 = vcmp.eq.s32.totalorder %v2078_v26, %v598_v60 }
 0x11e   : > { %v495_v2 = vsub.f32 %v465_v1, %v494_v0  ;;  %v1601_v61 = vsel %vm680_vm13, 1.0, %v1901_v30  ;;  %v1602_v1 = vsel %vm681_vm0, 1.0, %v1901_v30 }
 0x120   : > { %v496_v3 = vadd.f32 1e-05, %v495_v2 }
 0x122   : > { %1810 = vrsqrt.f32 %v496_v3  ;;  %vm503_vm9 = vweird.f32 %v496_v3 }
 0x124   : > { %v652_v2 = vpop.permute.xlu1 %651 }
 0x125   : > { %vm698_vm3 = vcmp.eq.s32.totalorder %v2078_v26, %v652_v2 }
 0x128   : > { %v1811_v6 = vpop.eup %1810 }
 0x129   : > { %v498_v7 = vmul.f32 %v1811_v6, %v496_v3  ;;  %vm504_vm8 = vweird.f32 %v1811_v6  ;;  %v1618_v3 = vsel %vm697_vm1, 1.0, %v1901_v30 }
 0x12a   : > { %vm505_vm10 = vmor %vm503_vm9, %vm504_vm8  ;;  %vm693_vm8 = vcmp.eq.s32.totalorder %v2078_v26, %v637_v46  ;;  %vm678_vm9 = vcmp.eq.s32.totalorder %v2078_v26, %v592_v50 }
 0x12b   : > { %v499_v8 = vmul.f32 %v1811_v6, %v498_v7  ;;  %v1614_v52 = vsel %vm693_vm8, 1.0, %v1901_v30  ;;  %v1599_v53 = vsel %vm678_vm9, 1.0, %v1901_v30  ;;  %v1619_v7 = vsel %vm698_vm3, 1.0, %v1901_v30 }
 0x12d   : > { %v500_v11 = vmul.f32 0.5, %v499_v8  ;;  %v607_v8 = vpop.permute.xlu1 %606 }
 0x12e   : > { %vm683_vm4 = vcmp.eq.s32.totalorder %v2078_v26, %v607_v8 }
 0x12f   : > { %v501_v12 = vsub.f32 1.5, %v500_v11  ;;  %v1604_v9 = vsel %vm683_vm4, 1.0, %v1901_v30  ;;  %v658_v11 = vpop.permute.xlu2 %657 }
 0x130   : > { %vm700_vm8 = vcmp.eq.s32.totalorder %v2078_v26, %v658_v11 }
 0x131   : > { %v502_v14 = vmul.f32 %v1811_v6, %v501_v12  ;;  %v1620_v12 = vsel %vm699_vm5, 1.0, %v1901_v30 }
 0x133   : > { %v506_v15 = vsel %vm505_vm10, %v1811_v6, %v502_v14  ;;  %vm694_vm10 = vcmp.eq.s32.totalorder %v2078_v26, %v640_v51  ;;  %v1603_v6 = vsel %vm682_vm2, 1.0, %v1901_v30 }
 0x134   : > { %v508_v17 = vmul.f32 %v507_v13, %v506_v15  ;;  %v1615_v55 = vsel %vm694_vm10, 1.0, %v1901_v30  ;;  %v1605_v13 = vsel %vm684_vm6, 1.0, %v1901_v30  ;;  %v1621_v15 = vsel %vm700_vm8, 1.0, %v1901_v30 }
 0x135   : > { %v661_v14 = vpop.permute.xlu1 %660 }
 0x136   : > { %1594 = vmatmul.msk.f32.vlgmr.msra.gmra.mxu2 %vm511_vm11, %v508_v17  ;;  %vm679_vm11 = vcmp.eq.s32.totalorder %v2078_v26, %v595_v56  ;;  %v664_v17 = vpop.permute.xlu0 %663  ;;  %vm701_vm10 = vcmp.eq.s32.totalorder %v2078_v26, %v661_v14 }
 0x137   : > { %v1600_v58 = vsel %vm679_vm11, 1.0, %v1901_v30  ;;  %v613_v16 = vpop.permute.xlu2 %612  ;;  %v1622_v19 = vsel %vm701_vm10, 1.0, %v1901_v30  ;;  %vm702_vm12 = vcmp.eq.s32.totalorder %v2078_v26, %v664_v17 }
 0x138   : > { %vm685_vm9 = vcmp.eq.s32.totalorder %v2078_v26, %v613_v16  ;;  %v1623_v23 = vsel %vm702_vm12, 1.0, %v1901_v30 }
 0x139   : > { %v1606_v18 = vsel %vm685_vm9, 1.0, %v1901_v30 }
 0x13d   : > { %v616_v20 = vpop.permute.xlu1 %615 }
 0x13e   : > { %vm686_vm11 = vcmp.eq.s32.totalorder %v2078_v26, %v616_v20  ;;  %v619_v22 = vpop.permute.xlu0 %618  ;;  %v1106_v20 = vld [vmem:[%s2220_s14 + $0x30] sm:$0xff] }
 0x13f   : > { %v1607_v21 = vsel %vm686_vm11, 1.0, %v1901_v30  ;;  %vm687_vm13 = vcmp.eq.s32.totalorder %v2078_v26, %v619_v22  ;;  %v667_v25 = vpop.permute.xlu2 %666 }
 0x140   : > { %v1608_v24 = vsel %vm687_vm13, 1.0, %v1901_v30 }
 0x1b9   : > { %v535_v33 = vpop.f32.mrf.mxu2 }
 0x1ba   : > { %v541_v36 = vmul.f32 %v540_v28, %v535_v33  ;;  %1627 = vmatpush.msk.msrb.mxu1 %vm867_vm14, %v535_v33  ;;  %1713 = vmatpush.msk.msra.mxu3 %vm867_vm14, %v535_v33  ;;  %v670_v28 = vpop.permute.xlu1 %669  ;;  %v1100_v33 = vld [vmem:[%s2220_s14] sm:$0xff] }
 0x1bb   : > { %1628 = vmatmul.msk.f32.vlgmr.msrb.gmra.mxu1 %vm770_vm15, %v1595_v31  ;;  %1642 = vmatmul.msk.f32.vlgmr.msra.gmra.mxu3 %vm770_vm15, %v2086_v34  ;;  %vm704_vm0 = vcmp.eq.s32.totalorder %v2078_v26, %v670_v28 }
 0x1bc   : > { %v543_v39 = vsub.f32 %v542_v32, %v541_v36  ;;  %v1625_v29 = vsel %vm704_vm0, 1.0, %v1901_v30 }
 0x1be   : > { %1660 = vmatpush.msk.msrb.mxu0 %vm867_vm14, %v543_v39  ;;  %1714 = vmatpush.msk.msrb.mxu2 %vm867_vm14, %v543_v39  ;;  %vm696_vm14 = vcmp.eq.s32.totalorder %v2078_v26, %v646_v57 }
 0x1bf   : > { %1661 = vmatmul.msk.f32.vlgmr.msrb.gmra.mxu0 %vm770_vm15, %v1595_v31  ;;  %1677 = vmatmul.msk.f32.vlgmr.msrb.gmra.mxu2 %vm770_vm15, %v1611_v38  ;;  %v1617_v0 = vsel %vm696_vm14, 1.0, %v1901_v30  ;;  %vm703_vm14 = vcmp.eq.s32.totalorder %v2078_v26, %v667_v25  ;;  %v673_v31 = vpop.permute.xlu2 %672  ;;  %v1120_v25 = vld [vmem:[%s2220_s14 + $0xa0] sm:$0xff] }
 0x1c0   : > { %v1624_v27 = vsel %vm703_vm14, 1.0, %v1901_v30  ;;  %vm705_vm1 = vcmp.eq.s32.totalorder %v2078_v26, %v673_v31 }
 0x1c1   : > { %v1626_v32 = vsel %vm705_vm1, 1.0, %v1901_v30 }
 0x1c3   : > { %1629 = vmatmul.msk.f32.gmra.mxu1 %vm770_vm15, %v1596_v41  ;;  %1643 = vmatmul.msk.f32.gmra.mxu3 %vm770_vm15, %v2101_v40 }
 0x1c7   : > { %1662 = vmatmul.msk.f32.gmra.mxu0 %vm770_vm15, %v1596_v41  ;;  %1678 = vmatmul.msk.f32.gmra.mxu2 %vm770_vm15, %v1612_v43 }
 0x1cb   : > { %1630 = vmatmul.msk.f32.gmra.mxu1 %vm770_vm15, %v1597_v45  ;;  %1644 = vmatmul.msk.f32.gmra.mxu3 %vm770_vm15, %v1611_v38  ;;  %v1101_v38 = vld [vmem:[%s2220_s14 + $0x8] sm:$0xff] }
 0x1cf   : > { %1663 = vmatmul.msk.f32.gmra.mxu0 %vm770_vm15, %v1597_v45  ;;  %1679 = vmatmul.msk.f32.gmra.mxu2 %vm770_vm15, %v1613_v47  ;;  %v1102_v45 = vld [vmem:[%s2220_s14 + $0x10] sm:$0xff] }
 0x1d3   : > { %1631 = vmatmul.msk.f32.gmra.mxu1 %vm770_vm15, %v1598_v49  ;;  %1645 = vmatmul.msk.f32.gmra.mxu3 %vm770_vm15, %v1612_v43 }
 0x1d7   : > { %1664 = vmatmul.msk.f32.gmra.mxu0 %vm770_vm15, %v1598_v49  ;;  %1680 = vmatmul.msk.f32.gmra.mxu2 %vm770_vm15, %v1614_v52  ;;  %v1116_v49 = vld [vmem:[%s2220_s14 + $0x80] sm:$0xff] }
 0x1db   : > { %1632 = vmatmul.msk.f32.gmra.mxu1 %vm770_vm15, %v1599_v53  ;;  %1646 = vmatmul.msk.f32.gmra.mxu3 %vm770_vm15, %v1613_v47 }
 0x1df   : > { %1665 = vmatmul.msk.f32.gmra.mxu0 %vm770_vm15, %v1599_v53  ;;  %1681 = vmatmul.msk.f32.gmra.mxu2 %vm770_vm15, %v1615_v55 }
 0x1e3   : > { %1633 = vmatmul.msk.f32.gmra.mxu1 %vm770_vm15, %v1600_v58  ;;  %1647 = vmatmul.msk.f32.gmra.mxu3 %vm770_vm15, %v1614_v52 }
 0x1e7   : > { %1666 = vmatmul.msk.f32.gmra.mxu0 %vm770_vm15, %v1600_v58  ;;  %1682 = vmatmul.msk.f32.gmra.mxu2 %vm770_vm15, %v1616_v59 }
 0x1eb   : > { %1634 = vmatmul.msk.f32.gmra.mxu1 %vm770_vm15, %v1601_v61  ;;  %1648 = vmatmul.msk.f32.gmra.mxu3 %vm770_vm15, %v1615_v55 }
 0x1ef   : > { %1667 = vmatmul.msk.f32.gmra.mxu0 %vm770_vm15, %v1601_v61  ;;  %1683 = vmatmul.msk.f32.gmra.mxu2 %vm770_vm15, %v1617_v0 }
 0x1f3   : > { %1635 = vmatmul.msk.f32.gmra.mxu1 %vm770_vm15, %v1602_v1  ;;  %1649 = vmatmul.msk.f32.gmra.mxu3 %vm770_vm15, %v1616_v59  ;;  %v1117_v59 = vld [vmem:[%s2220_s14 + $0x88] sm:$0xff] }
 0x1f7   : > { %1668 = vmatmul.msk.f32.gmra.mxu0 %vm770_vm15, %v1602_v1  ;;  %1684 = vmatmul.msk.f32.gmra.mxu2 %vm770_vm15, %v1618_v3 }
 0x1fb   : > { %1636 = vmatmul.msk.f32.gmra.mxu1 %vm770_vm15, %v1603_v6  ;;  %1650 = vmatmul.msk.f32.gmra.mxu3 %vm770_vm15, %v1617_v0  ;;  %v1104_v0 = vld [vmem:[%s2220_s14 + $0x20] sm:$0xff] }
 0x1ff   : > { %1669 = vmatmul.msk.f32.gmra.mxu0 %vm770_vm15, %v1603_v6  ;;  %1685 = vmatmul.msk.f32.gmra.mxu2 %vm770_vm15, %v1619_v7 }
 0x203   : > { %1637 = vmatmul.msk.f32.gmra.mxu1 %vm770_vm15, %v1604_v9  ;;  %1651 = vmatmul.msk.f32.gmra.mxu3 %vm770_vm15, %v1618_v3 }
 0x207   : > { %1670 = vmatmul.msk.f32.gmra.mxu0 %vm770_vm15, %v1604_v9  ;;  %1686 = vmatmul.msk.f32.gmra.mxu2 %vm770_vm15, %v1620_v12 }
 0x20b   : > { %1638 = vmatmul.msk.f32.gmra.mxu1 %vm770_vm15, %v1605_v13  ;;  %1652 = vmatmul.msk.f32.gmra.mxu3 %vm770_vm15, %v1619_v7 }
 0x20f   : > { %1671 = vmatmul.msk.f32.gmra.mxu0 %vm770_vm15, %v1605_v13  ;;  %1687 = vmatmul.msk.f32.gmra.mxu2 %vm770_vm15, %v1621_v15 }
 0x213   : > { %1639 = vmatmul.msk.f32.gmra.mxu1 %vm770_vm15, %v1606_v18  ;;  %1653 = vmatmul.msk.f32.gmra.mxu3 %vm770_vm15, %v1620_v12 }
 0x217   : > { %1672 = vmatmul.msk.f32.gmra.mxu0 %vm770_vm15, %v1606_v18  ;;  %1688 = vmatmul.msk.f32.gmra.mxu2 %vm770_vm15, %v1622_v19 }
 0x21b   : > { %1640 = vmatmul.msk.f32.gmra.mxu1 %vm770_vm15, %v1607_v21  ;;  %1654 = vmatmul.msk.f32.gmra.mxu3 %vm770_vm15, %v1621_v15  ;;  %v1119_v15 = vld [vmem:[%s2220_s14 + $0x98] sm:$0xff] }
 0x21f   : > { %1673 = vmatmul.msk.f32.gmra.mxu0 %vm770_vm15, %v1607_v21  ;;  %1689 = vmatmul.msk.f32.gmra.mxu2 %vm770_vm15, %v1623_v23 }
 0x223   : > { %1641 = vmatmul.msk.f32.gmra.mxu1 %vm770_vm15, %v1608_v24  ;;  %1655 = vmatmul.msk.f32.gmra.mxu3 %vm770_vm15, %v1622_v19 }
 0x227   : > { %1674 = vmatmul.msk.f32.gmra.mxu0 %vm770_vm15, %v1608_v24  ;;  %1690 = vmatmul.msk.f32.gmra.mxu2 %vm770_vm15, %v1624_v27 }
 0x22b   : > { %1656 = vmatmul.msk.f32.gmra.mxu3 %vm770_vm15, %v1623_v23 }
 0x22f   : > { %1675 = vmatmul.msk.f32.gmra.mxu0 %vm770_vm15, %v2086_v34  ;;  %1691 = vmatmul.msk.f32.gmra.mxu2 %vm770_vm15, %v1625_v29 }
 0x233   : > { %1657 = vmatmul.msk.f32.gmra.mxu3 %vm770_vm15, %v1624_v27 }
 0x237   : > { %1676 = vmatmul.msk.f32.gmra.mxu0 %vm770_vm15, %v2101_v40  ;;  %1692 = vmatmul.msk.f32.gmra.mxu2 %vm770_vm15, %v1626_v32 }
 0x238   : > { %v888_v34 = vpop.f32.mrf.mxu1 }
 0x239   : > { %v1132_v26 = vmul.f32 %v1100_v33, %v888_v34 }
 0x23b   : > { %1658 = vmatmul.msk.f32.gmra.mxu3 %vm770_vm15, %v1625_v29 }
 0x23c   : > { %v1004_v35 = vpop.f32.mrf.mxu0 }
 0x23d   : > { %v1164_v36 = vadd.f32 %v1132_v26, %v1004_v35 }
 0x23e   : > { %v2229_v37 = vpop.f32.mrf.mxu3 }
 0x23f   : > { %1196 = vst.msk [vmem:[%s2231_s24] sm:$0xff] %vm440_vm7, %v1164_v36  ;;  %v1121_v36 = vld [vmem:[%s2220_s14 + $0xa8] sm:$0xff] }
 0x240   : > { %v891_v30 = vpop.f32.mrf.mxu1 }
 0x241   : > { %v1133_v40 = vmul.f32 %v1101_v38, %v891_v30 }
 0x242   : > { %v1052_v39 = vpop.f32.mrf.mxu2 }
 0x243   : > { %1659 = vmatmul.msk.f32.gmra.mxu3 %vm770_vm15, %v1626_v32  ;;  %v1107_v32 = vld [vmem:[%s2220_s14 + $0x38] sm:$0xff] }
 0x244   : > { %v1007_v41 = vpop.f32.mrf.mxu0 }
 0x245   : > { %v1165_v42 = vadd.f32 %v1133_v40, %v1007_v41  ;;  %v1108_v41 = vld [vmem:[%s2220_s14 + $0x40] sm:$0xff] }
 0x246   : > { %v2237_v43 = vpop.f32.mrf.mxu3 }
 0x247   : > { %1197 = vst.msk [vmem:[%s2231_s24 + $0x8] sm:$0xff] %vm440_vm7, %v1165_v42 }
 0x248   : > { %v894_v44 = vpop.f32.mrf.mxu1 }
 0x249   : > { %v1134_v47 = vmul.f32 %v1102_v45, %v894_v44 }
 0x24a   : > { %v1055_v46 = vpop.f32.mrf.mxu2 }
 0x24c   : > { %v1010_v48 = vpop.f32.mrf.mxu0 }
 0x24d   : > { %v1166_v50 = vadd.f32 %v1134_v47, %v1010_v48  ;;  %v1122_v47 = vld [vmem:[%s2220_s14 + $0xb0] sm:$0xff] }
 0x24e   : > { %v936_v51 = vpop.f32.mrf.mxu3 }
 0x24f   : > { %1198 = vst.msk [vmem:[%s2231_s24 + $0x10] sm:$0xff] %vm440_vm7, %v1166_v50  ;;  %v1148_v52 = vmul.f32 %v1116_v49, %v936_v51 }
 0x250   : > { %v897_v53 = vpop.f32.mrf.mxu1 }
 0x251   : > { %v1180_v55 = vadd.f32 %v1148_v52, %v1052_v39  ;;  %v1135_v57 = vmul.f32 %v1103_v54, %v897_v53  ;;  %v1109_v52 = vld [vmem:[%s2220_s14 + $0x48] sm:$0xff] }
 0x252   : > { %v1058_v56 = vpop.f32.mrf.mxu2 }
 0x253   : > { %1212 = vst.msk [vmem:[%s2231_s24 + $0x80] sm:$0xff] %vm440_vm7, %v1180_v55 }
 0x254   : > { %v1013_v58 = vpop.f32.mrf.mxu0 }
 0x255   : > { %v1167_v60 = vadd.f32 %v1135_v57, %v1013_v58  ;;  %v1123_v57 = vld [vmem:[%s2220_s14 + $0xb8] sm:$0xff] }
 0x256   : > { %v939_v61 = vpop.f32.mrf.mxu3 }
 0x257   : > { %1199 = vst.msk [vmem:[%s2231_s24 + $0x18] sm:$0xff] %vm440_vm7, %v1167_v60  ;;  %v1149_v62 = vmul.f32 %v1117_v59, %v939_v61 }
 0x258   : > { %v900_v63 = vpop.f32.mrf.mxu1 }
 0x259   : > { %v1181_v1 = vadd.f32 %v1149_v62, %v1055_v46  ;;  %v1136_v3 = vmul.f32 %v1104_v0, %v900_v63  ;;  %v1110_v62 = vld [vmem:[%s2220_s14 + $0x50] sm:$0xff] }
 0x25a   : > { %v1061_v2 = vpop.f32.mrf.mxu2 }
 0x25b   : > { %1213 = vst.msk [vmem:[%s2231_s24 + $0x88] sm:$0xff] %vm440_vm7, %v1181_v1 }
 0x25c   : > { %v1016_v4 = vpop.f32.mrf.mxu0 }
 0x25d   : > { %v1168_v6 = vadd.f32 %v1136_v3, %v1016_v4  ;;  %v1124_v3 = vld [vmem:[%s2220_s14 + $0xc0] sm:$0xff] }
 0x25e   : > { %v942_v7 = vpop.f32.mrf.mxu3 }
 0x25f   : > { %1200 = vst.msk [vmem:[%s2231_s24 + $0x20] sm:$0xff] %vm440_vm7, %v1168_v6  ;;  %v1150_v8 = vmul.f32 %v1118_v5, %v942_v7 }
 0x260   : > { %v903_v9 = vpop.f32.mrf.mxu1 }
 0x261   : > { %v1182_v11 = vadd.f32 %v1150_v8, %v1058_v56  ;;  %v1137_v13 = vmul.f32 %v1105_v10, %v903_v9  ;;  %v1111_v8 = vld [vmem:[%s2220_s14 + $0x58] sm:$0xff] }
 0x262   : > { %v1064_v12 = vpop.f32.mrf.mxu2 }
 0x263   : > { %1214 = vst.msk [vmem:[%s2231_s24 + $0x90] sm:$0xff] %vm440_vm7, %v1182_v11 }
 0x264   : > { %v1019_v14 = vpop.f32.mrf.mxu0 }
 0x265   : > { %v1169_v16 = vadd.f32 %v1137_v13, %v1019_v14 }
 0x266   : > { %v945_v17 = vpop.f32.mrf.mxu3 }
 0x267   : > { %1201 = vst.msk [vmem:[%s2231_s24 + $0x28] sm:$0xff] %vm440_vm7, %v1169_v16  ;;  %v1151_v18 = vmul.f32 %v1119_v15, %v945_v17 }
 0x268   : > { %v906_v19 = vpop.f32.mrf.mxu1 }
 0x269   : > { %v1183_v21 = vadd.f32 %v1151_v18, %v1061_v2  ;;  %v1138_v23 = vmul.f32 %v1106_v20, %v906_v19  ;;  %v1112_v18 = vld [vmem:[%s2220_s14 + $0x60] sm:$0xff] }
 0x26a   : > { %v1067_v22 = vpop.f32.mrf.mxu2 }
 0x26b   : > { %1215 = vst.msk [vmem:[%s2231_s24 + $0x98] sm:$0xff] %vm440_vm7, %v1183_v21 }
 0x26c   : > { %v1022_v24 = vpop.f32.mrf.mxu0 }
 0x26d   : > { %v1170_v27 = vadd.f32 %v1138_v23, %v1022_v24 }
 0x26e   : > { %v948_v28 = vpop.f32.mrf.mxu3 }
 0x26f   : > { %1202 = vst.msk [vmem:[%s2231_s24 + $0x30] sm:$0xff] %vm440_vm7, %v1170_v27  ;;  %v1152_v29 = vmul.f32 %v1120_v25, %v948_v28 }
 0x270   : > { %v909_v31 = vpop.f32.mrf.mxu1 }
 0x271   : > { %v1184_v33 = vadd.f32 %v1152_v29, %v1064_v12  ;;  %v1139_v26 = vmul.f32 %v1107_v32, %v909_v31  ;;  %v1125_v12 = vld [vmem:[%s2220_s14 + $0xc8] sm:$0xff] }
 0x272   : > { %v1070_v34 = vpop.f32.mrf.mxu2  ;;  %v1113_v29 = vld [vmem:[%s2220_s14 + $0x68] sm:$0xff] }
 0x273   : > { %1216 = vst.msk [vmem:[%s2231_s24 + $0xa0] sm:$0xff] %vm440_vm7, %v1184_v33 }
 0x274   : > { %v1025_v35 = vpop.f32.mrf.mxu0 }
 0x275   : > { %v1171_v30 = vadd.f32 %v1139_v26, %v1025_v35 }
 0x276   : > { %v951_v38 = vpop.f32.mrf.mxu3 }
 0x277   : > { %1203 = vst.msk [vmem:[%s2231_s24 + $0x38] sm:$0xff] %vm440_vm7, %v1171_v30  ;;  %v1153_v39 = vmul.f32 %v1121_v36, %v951_v38  ;;  %v1114_v30 = vld [vmem:[%s2220_s14 + $0x70] sm:$0xff] }
 0x278   : > { %v912_v40 = vpop.f32.mrf.mxu1 }
 0x279   : > { %v1185_v42 = vadd.f32 %v1153_v39, %v1067_v22  ;;  %v1140_v45 = vmul.f32 %v1108_v41, %v912_v40  ;;  %v1126_v22 = vld [vmem:[%s2220_s14 + $0xd0] sm:$0xff]  ;;  %v1146_v40 = vmul.f32 %v1114_v30, %v2229_v37 }
 0x27a   : > { %v1073_v44 = vpop.f32.mrf.mxu2 }
 0x27b   : > { %1217 = vst.msk [vmem:[%s2231_s24 + $0xa8] sm:$0xff] %vm440_vm7, %v1185_v42  ;;  %v1128_v42 = vld [vmem:[%s2220_s14 + $0xe0] sm:$0xff] }
 0x27c   : > { %v1028_v46 = vpop.f32.mrf.mxu0 }
 0x27d   : > { %v1172_v48 = vadd.f32 %v1140_v45, %v1028_v46 }
 0x27e   : > { %v954_v49 = vpop.f32.mrf.mxu3 }
 0x27f   : > { %1204 = vst.msk [vmem:[%s2231_s24 + $0x40] sm:$0xff] %vm440_vm7, %v1172_v48  ;;  %v1154_v50 = vmul.f32 %v1122_v47, %v954_v49  ;;  %v1115_v47 = vld [vmem:[%s2220_s14 + $0x78] sm:$0xff] }
 0x280   : > { %v915_v51 = vpop.f32.mrf.mxu1  ;;  %v1147_v49 = vmul.f32 %v1115_v47, %v2237_v43 }
 0x281   : > { %v1186_v53 = vadd.f32 %v1154_v50, %v1070_v34  ;;  %v1141_v55 = vmul.f32 %v1109_v52, %v915_v51  ;;  %v1127_v34 = vld [vmem:[%s2220_s14 + $0xd8] sm:$0xff]  ;;  %v1129_v51 = vld [vmem:[%s2220_s14 + $0xe8] sm:$0xff] }
 0x282   : > { %v1076_v54 = vpop.f32.mrf.mxu2 }
 0x283   : > { %1218 = vst.msk [vmem:[%s2231_s24 + $0xb0] sm:$0xff] %vm440_vm7, %v1186_v53 }
 0x284   : > { %v1031_v56 = vpop.f32.mrf.mxu0 }
 0x285   : > { %v1173_v58 = vadd.f32 %v1141_v55, %v1031_v56  ;;  %v1130_v56 = vld [vmem:[%s2220_s14 + $0xf0] sm:$0xff] }
 0x286   : > { %v957_v59 = vpop.f32.mrf.mxu3 }
 0x287   : > { %1205 = vst.msk [vmem:[%s2231_s24 + $0x48] sm:$0xff] %vm440_vm7, %v1173_v58  ;;  %v1155_v60 = vmul.f32 %v1123_v57, %v957_v59 }
 0x288   : > { %v918_v61 = vpop.f32.mrf.mxu1 }
 0x289   : > { %v1187_v63 = vadd.f32 %v1155_v60, %v1073_v44  ;;  %v1142_v0 = vmul.f32 %v1110_v62, %v918_v61  ;;  %v1131_v60 = vld [vmem:[%s2220_s14 + $0xf8] sm:$0xff] }
 0x28a   : > { %v1079_v1 = vpop.f32.mrf.mxu2 }
 0x28b   : > { %1219 = vst.msk [vmem:[%s2231_s24 + $0xb8] sm:$0xff] %vm440_vm7, %v1187_v63 }
 0x28c   : > { %v1034_v2 = vpop.f32.mrf.mxu0 }
 0x28d   : > { %v1174_v4 = vadd.f32 %v1142_v0, %v1034_v2 }
 0x28e   : > { %v960_v5 = vpop.f32.mrf.mxu3 }
 0x28f   : > { %1206 = vst.msk [vmem:[%s2231_s24 + $0x50] sm:$0xff] %vm440_vm7, %v1174_v4  ;;  %v1156_v6 = vmul.f32 %v1124_v3, %v960_v5 }
 0x290   : > { %v921_v7 = vpop.f32.mrf.mxu1 }
 0x291   : > { %v1188_v9 = vadd.f32 %v1156_v6, %v1076_v54  ;;  %v1143_v10 = vmul.f32 %v1111_v8, %v921_v7 }
 0x292   : > { %v1082_v14 = vpop.f32.mrf.mxu2 }
 0x293   : > { %1220 = vst.msk [vmem:[%s2231_s24 + $0xc0] sm:$0xff] %vm440_vm7, %v1188_v9 }
 0x294   : > { %v1037_v11 = vpop.f32.mrf.mxu0 }
 0x295   : > { %v1175_v13 = vadd.f32 %v1143_v10, %v1037_v11 }
 0x296   : > { %v963_v15 = vpop.f32.mrf.mxu3 }
 0x297   : > { %1207 = vst.msk [vmem:[%s2231_s24 + $0x58] sm:$0xff] %vm440_vm7, %v1175_v13  ;;  %v1157_v16 = vmul.f32 %v1125_v12, %v963_v15 }
 0x298   : > { %v924_v17 = vpop.f32.mrf.mxu1 }
 0x299   : > { %v1189_v19 = vadd.f32 %v1157_v16, %v1079_v1  ;;  %v1144_v20 = vmul.f32 %v1112_v18, %v924_v17 }
 0x29a   : > { %v1085_v27 = vpop.f32.mrf.mxu2 }
 0x29b   : > { %1221 = vst.msk [vmem:[%s2231_s24 + $0xc8] sm:$0xff] %vm440_vm7, %v1189_v19 }
 0x29c   : > { %v1040_v21 = vpop.f32.mrf.mxu0 }
 0x29d   : > { %v1176_v23 = vadd.f32 %v1144_v20, %v1040_v21 }
 0x29e   : > { %v966_v24 = vpop.f32.mrf.mxu3 }
 0x29f   : > { %1208 = vst.msk [vmem:[%s2231_s24 + $0x60] sm:$0xff] %vm440_vm7, %v1176_v23  ;;  %v1158_v25 = vmul.f32 %v1126_v22, %v966_v24 }
 0x2a0   : > { %v927_v28 = vpop.f32.mrf.mxu1 }
 0x2a1   : > { %v1190_v31 = vadd.f32 %v1158_v25, %v1082_v14  ;;  %v1145_v32 = vmul.f32 %v1113_v29, %v927_v28 }
 0x2a2   : > { %v1088_v39 = vpop.f32.mrf.mxu2 }
 0x2a3   : > { %1222 = vst.msk [vmem:[%s2231_s24 + $0xd0] sm:$0xff] %vm440_vm7, %v1190_v31 }
 0x2a4   : > { %v1043_v33 = vpop.f32.mrf.mxu0 }
 0x2a5   : > { %v1177_v26 = vadd.f32 %v1145_v32, %v1043_v33 }
 0x2a6   : > { %v969_v35 = vpop.f32.mrf.mxu3 }
 0x2a7   : > { %1209 = vst.msk [vmem:[%s2231_s24 + $0x68] sm:$0xff] %vm440_vm7, %v1177_v26  ;;  %v1159_v36 = vmul.f32 %v1127_v34, %v969_v35 }
 0x2a9   : > { %v1191_v38 = vadd.f32 %v1159_v36, %v1085_v27 }
 0x2aa   : > { %v1091_v37 = vpop.f32.mrf.mxu2 }
 0x2ab   : > { %1223 = vst.msk [vmem:[%s2231_s24 + $0xd8] sm:$0xff] %vm440_vm7, %v1191_v38 }
 0x2ac   : > { %v1046_v41 = vpop.f32.mrf.mxu0 }
 0x2ad   : > { %v1178_v44 = vadd.f32 %v1146_v40, %v1046_v41 }
 0x2ae   : > { %v972_v45 = vpop.f32.mrf.mxu3 }
 0x2af   : > { %1210 = vst.msk [vmem:[%s2231_s24 + $0x70] sm:$0xff] %vm440_vm7, %v1178_v44  ;;  %v1160_v46 = vmul.f32 %v1128_v42, %v972_v45 }
 0x2b1   : > { %v1192_v48 = vadd.f32 %v1160_v46, %v1088_v39 }
 0x2b2   : > { %v1094_v57 = vpop.f32.mrf.mxu2 }
 0x2b3   : > { %1224 = vst.msk [vmem:[%s2231_s24 + $0xe0] sm:$0xff] %vm440_vm7, %v1192_v48 }
 0x2b4   : > { %v1049_v50 = vpop.f32.mrf.mxu0 }
 0x2b5   : > { %v1179_v52 = vadd.f32 %v1147_v49, %v1049_v50 }
 0x2b6   : > { %v975_v53 = vpop.f32.mrf.mxu3 }
 0x2b7   : > { %1211 = vst.msk [vmem:[%s2231_s24 + $0x78] sm:$0xff] %vm440_vm7, %v1179_v52  ;;  %v1161_v54 = vmul.f32 %v1129_v51, %v975_v53 }
 0x2b9   : > { %v1193_v55 = vadd.f32 %v1161_v54, %v1091_v37 }
 0x2ba   : > { %v1097_v63 = vpop.f32.mrf.mxu2 }
 0x2bb   : > { %1225 = vst.msk [vmem:[%s2231_s24 + $0xe8] sm:$0xff] %vm440_vm7, %v1193_v55 }
 0x2be   : > { %v978_v58 = vpop.f32.mrf.mxu3 }
 0x2bf   : > { %v1162_v43 = vmul.f32 %v1130_v56, %v978_v58 }
 0x2c1   : > { %v1194_v59 = vadd.f32 %v1162_v43, %v1094_v57 }
 0x2c3   : > { %1226 = vst.msk [vmem:[%s2231_s24 + $0xf0] sm:$0xff] %vm440_vm7, %v1194_v59 }
 0x2c6   : > { %v981_v61 = vpop.f32.mrf.mxu3 }
 0x2c7   : > { %v1163_v62 = vmul.f32 %v1131_v60, %v981_v61  ;;  %1234 = sbr.rel (!%p1977_p4) target bundleno = 780 (0x30c), region = 60 }
 0x2c9   : > { %v1195_v0 = vadd.f32 %v1163_v62, %v1097_v63 }
 0x2cb   : > { %1227 = vst.msk [vmem:[%s2231_s24 + $0xf8] sm:$0xff] %vm440_vm7, %v1195_v0 }
 0x2cc   : > { %s2495_s30 = smov (!%p1237_p8, %s1236_s30), 32 }
 0x2cd   : > { %s1695_s25 = sshll.u32 %s2495_s30, 3 }
 0x2ce   : > { %p1698_p9 = scmp.eq.s32.totalorder %s1695_s25, 0 }
 0x2cf   : > { %s2346_s26 = sshrl.u32 (!%p1698_p9), %s2495_s30, 5 }
 0x2d0   : > { %1245 = sbr.rel (%p1698_p9) target bundleno = 780 (0x30c), region = 64  ;;  %p1699_p10 = scmp.le.s32.totalorder (!%p1698_p9), %s2346_s26, 0 }
 0x2d5   : > { %1530 = sbr.rel (%p1699_p10) target bundleno = 763 (0x2fb), region = 143  ;;  %s2486_s12 = smov (!%p1699_p10), %s2340_s21 }
 0x2d6   : > { %s2487_s17 = smov (!%p1699_p10), %s2231_s24  ;;  %s2355_s22 = smov (!%p1699_p10), 0  }
 0x2d7   : > { %s2357_s28 = smov (!%p1699_p10), 0  }
 0x2da LB: >> { %v1370_v1 = vld [vmem:[%s1874_s17] sm:$0xff]  ;;  %v1372_v2 = vld [vmem:[%s1874_s17 + $0x8] sm:$0xff]  ;;  %v1374_v3 = vld [vmem:[%s1874_s17 + $0x10] sm:$0xff]  ;;  %s1434_s29 = sadd.s32 1, %s1878_s22  ;;  %s1364_s28 = sadd.s32 1, %s1882_s28   ;;  %s1882_s28 = sphi %s2357_s28, %s1364_s28   ;;  %s1878_s22 = sphi %s2355_s22, %s2490_s22   ;;  %s1874_s17 = sphi %s2487_s17, %s2489_s17   ;;  %s1870_s12 = sphi %s2486_s12, %s2488_s12  }
 0x2db   : >> { %1371 = vst [vmem:[%s1870_s12] sm:$0xff] %v1370_v1  ;;  %v1376_v4 = vld [vmem:[%s1874_s17 + $0x18] sm:$0xff]  ;;  %p1435_p11 = scmp.ge.s32.totalorder %s1434_s29, %s2346_s26  ;;  %v1378_v5 = vld [vmem:[%s1874_s17 + $0x20] sm:$0xff]  ;;  %v1380_v6 = vld [vmem:[%s1874_s17 + $0x28] sm:$0xff]  ;;  %p1363_p12 = scmp.ge.s32.totalorder %s1364_s28, %s2346_s26 }
 0x2dc   : >> { %1373 = vst [vmem:[%s1870_s12 + $0x8] sm:$0xff] %v1372_v2  ;;  %v1382_v7 = vld [vmem:[%s1874_s17 + $0x30] sm:$0xff]  ;;  %v1384_v8 = vld [vmem:[%s1874_s17 + $0x38] sm:$0xff]  ;;  %v1386_v9 = vld [vmem:[%s1874_s17 + $0x40] sm:$0xff] }
 0x2dd   : >> { %1375 = vst [vmem:[%s1870_s12 + $0x10] sm:$0xff] %v1374_v3  ;;  %s2497_s29 = smov (%p1435_p11, %s1434_s29), 0  ;;  %v1388_v10 = vld [vmem:[%s1874_s17 + $0x48] sm:$0xff]  ;;  %v1390_v11 = vld [vmem:[%s1874_s17 + $0x50] sm:$0xff]  ;;  %v1392_v12 = vld [vmem:[%s1874_s17 + $0x58] sm:$0xff] }
 0x2de   : >> { %1377 = vst [vmem:[%s1870_s12 + $0x18] sm:$0xff] %v1376_v4  ;;  %s1700_s27 = sshll.u32 %s2497_s29, 8  ;;  %v1394_v13 = vld [vmem:[%s1874_s17 + $0x60] sm:$0xff]  ;;  %v1396_v14 = vld [vmem:[%s1874_s17 + $0x68] sm:$0xff]  ;;  %v1398_v15 = vld [vmem:[%s1874_s17 + $0x70] sm:$0xff]  ;;  %s2490_s22 = smov %s2497_s29 }
 0x2df   : >> { %1379 = vst [vmem:[%s1870_s12 + $0x20] sm:$0xff] %v1378_v5  ;;  %s2389_s11 = scalar_lea.vmem %s2231_s24, %s1700_s27 [#allocation2]   ;;  %s2392_s14 = scalar_lea.vmem %s2340_s21, %s1700_s27   ;;  %v1400_v16 = vld [vmem:[%s1874_s17 + $0x78] sm:$0xff]  ;;  %v1402_v17 = vld [vmem:[%s1874_s17 + $0x80] sm:$0xff]  ;;  %v1404_v18 = vld [vmem:[%s1874_s17 + $0x88] sm:$0xff] }
 0x2e0   : >> { %1381 = vst [vmem:[%s1870_s12 + $0x28] sm:$0xff] %v1380_v6  ;;  %v1406_v19 = vld [vmem:[%s1874_s17 + $0x90] sm:$0xff]  ;;  %v1408_v20 = vld [vmem:[%s1874_s17 + $0x98] sm:$0xff]  ;;  %v1410_v21 = vld [vmem:[%s1874_s17 + $0xa0] sm:$0xff] }
 0x2e1   : >> { %1383 = vst [vmem:[%s1870_s12 + $0x30] sm:$0xff] %v1382_v7  ;;  %v1412_v22 = vld [vmem:[%s1874_s17 + $0xa8] sm:$0xff]  ;;  %v1414_v23 = vld [vmem:[%s1874_s17 + $0xb0] sm:$0xff]  ;;  %v1416_v24 = vld [vmem:[%s1874_s17 + $0xb8] sm:$0xff] }
 0x2e2   : >> { %1385 = vst [vmem:[%s1870_s12 + $0x38] sm:$0xff] %v1384_v8  ;;  %v1418_v25 = vld [vmem:[%s1874_s17 + $0xc0] sm:$0xff]  ;;  %v1420_v27 = vld [vmem:[%s1874_s17 + $0xc8] sm:$0xff]  ;;  %v1422_v28 = vld [vmem:[%s1874_s17 + $0xd0] sm:$0xff] }
 0x2e3   : >> { %1387 = vst [vmem:[%s1870_s12 + $0x40] sm:$0xff] %v1386_v9  ;;  %v1424_v29 = vld [vmem:[%s1874_s17 + $0xd8] sm:$0xff]  ;;  %v1426_v31 = vld [vmem:[%s1874_s17 + $0xe0] sm:$0xff]  ;;  %v1428_v32 = vld [vmem:[%s1874_s17 + $0xe8] sm:$0xff] }
 0x2e4   : >> { %1389 = vst [vmem:[%s1870_s12 + $0x48] sm:$0xff] %v1388_v10  ;;  %v1430_v33 = vld [vmem:[%s1874_s17 + $0xf0] sm:$0xff]  ;;  %v1432_v34 = vld [vmem:[%s1874_s17 + $0xf8] sm:$0xff]  ;;  %s2489_s17 = smov %s2389_s11 }
 0x2e5   : >> { %1391 = vst [vmem:[%s1870_s12 + $0x50] sm:$0xff] %v1390_v11 }
 0x2e6   : >> { %1393 = vst [vmem:[%s1870_s12 + $0x58] sm:$0xff] %v1392_v12 }
 0x2e7   : >> { %1395 = vst [vmem:[%s1870_s12 + $0x60] sm:$0xff] %v1394_v13 }
 0x2e8   : >> { %1397 = vst [vmem:[%s1870_s12 + $0x68] sm:$0xff] %v1396_v14 }
 0x2e9   : >> { %1399 = vst [vmem:[%s1870_s12 + $0x70] sm:$0xff] %v1398_v15 }
 0x2ea   : >> { %1401 = vst [vmem:[%s1870_s12 + $0x78] sm:$0xff] %v1400_v16 }
 0x2eb   : >> { %1403 = vst [vmem:[%s1870_s12 + $0x80] sm:$0xff] %v1402_v17 }
 0x2ec   : >> { %1405 = vst [vmem:[%s1870_s12 + $0x88] sm:$0xff] %v1404_v18 }
 0x2ed   : >> { %1407 = vst [vmem:[%s1870_s12 + $0x90] sm:$0xff] %v1406_v19 }
 0x2ee   : >> { %1409 = vst [vmem:[%s1870_s12 + $0x98] sm:$0xff] %v1408_v20 }
 0x2ef   : >> { %1411 = vst [vmem:[%s1870_s12 + $0xa0] sm:$0xff] %v1410_v21 }
 0x2f0   : >> { %1413 = vst [vmem:[%s1870_s12 + $0xa8] sm:$0xff] %v1412_v22 }
 0x2f1   : >> { %1415 = vst [vmem:[%s1870_s12 + $0xb0] sm:$0xff] %v1414_v23 }
 0x2f2   : >> { %1417 = vst [vmem:[%s1870_s12 + $0xb8] sm:$0xff] %v1416_v24 }
 0x2f3   : >> { %1419 = vst [vmem:[%s1870_s12 + $0xc0] sm:$0xff] %v1418_v25 }
 0x2f4   : >> { %1421 = vst [vmem:[%s1870_s12 + $0xc8] sm:$0xff] %v1420_v27 }
 0x2f5   : >> { %1423 = vst [vmem:[%s1870_s12 + $0xd0] sm:$0xff] %v1422_v28 }
 0x2f6   : >> { %1425 = vst [vmem:[%s1870_s12 + $0xd8] sm:$0xff] %v1424_v29  ;;  %1366 = sbr.rel (!%p1363_p12) target bundleno = 730 (0x2da), region = 149 }
 0x2f7   : >> { %1427 = vst [vmem:[%s1870_s12 + $0xe0] sm:$0xff] %v1426_v31 }
 0x2f8   : >> { %1429 = vst [vmem:[%s1870_s12 + $0xe8] sm:$0xff] %v1428_v32 }
 0x2f9   : >> { %1431 = vst [vmem:[%s1870_s12 + $0xf0] sm:$0xff] %v1430_v33 }
 0x2fa   : >> { %1433 = vst [vmem:[%s1870_s12 + $0xf8] sm:$0xff] %v1432_v34  ;;  %s2488_s12 = smov %s2392_s14 }
 0x2fb PF: > { %s2457_s15 = sand.u32 31, %s2495_s30   ;;  %s1711_s23 = sshll.u32 %s2346_s26, 8 }
 0x2fc   : > { %s1445_s18 = scalar_lea.vmem %s2231_s24, %s1711_s23 [#allocation2]   ;;  %s1447_s19 = scalar_lea.vmem %s2340_s21, %s1711_s23  }
 0x2fd   : > { %p1705_p13 = scmp.le.s32.totalorder %s2457_s15, 0 }
 0x2fe   : > { %s1884_s20 = smov (!%p1705_p13), %s1447_s19   ;;  %s1888_s25 = smov (!%p1705_p13), %s1445_s18  }
 0x2ff   : > { %1544 = sbr.rel (%p1705_p13) target bundleno = 780 (0x30c), region = 154  ;;  %s1892_s27 = smov (!%p1705_p13), 0  }
 0x300   : > { %s1896_s29 = smov (!%p1705_p13), 0  }
 0x304 LB: >> { %v1457_v26 = vld [vmem:[%s1890_s25] sm:$0xff]  ;;  %s1459_s30 = sadd.s32 1, %s1894_s27  ;;  %s1451_s29 = sadd.s32 1, %s1898_s29   ;;  %s1898_s29 = sphi %s1896_s29, %s1451_s29   ;;  %s1894_s27 = sphi %s1892_s27, %s1893_s27   ;;  %s1890_s25 = sphi %s1888_s25, %s1464_s25   ;;  %s1886_s20 = sphi %s1884_s20, %s1465_s20  }
 0x305   : >> { %1458 = vst [vmem:[%s1886_s20] sm:$0xff] %v1457_v26  ;;  %p1460_p0 = scmp.ge.s32.totalorder %s1459_s30, %s2457_s15  ;;  %p1450_p1 = scmp.ge.s32.totalorder %s1451_s29, %s2457_s15 }
 0x307   : >> { %s2499_s30 = smov (%p1460_p0, %s1459_s30), 0  ;;  %1453 = sbr.rel (!%p1450_p1) target bundleno = 772 (0x304), region = 160 }
 0x308   : >> { %s1706_s24 = sshll.u32 %s2499_s30, 3  ;;  %s1893_s27 = smov %s2499_s30  }
 0x309   : >> { %s1464_s25 = scalar_lea.vmem %s1445_s18, %s1706_s24 [#allocation2]   ;;  %s1465_s20 = scalar_lea.vmem %s1447_s19, %s1706_s24  }
 0x30c PF: > { %p16_p2 = scmp.ge.s32.totalorder %s1967_s13, 6   ;;  %s2491_s30 = smov %s1862_s10 }
 0x30d   : > { %s2492_s10 = smov %s1975_s16  ;;  %s2493_s11 = smov %s1967_s13 }
 0x30e   :  { %18 = sbr.rel (!%p16_p2) target bundleno = 2 (0x2), region = 171 }

</bundles_post_ra>
